<compile_context>
chip_gen: v7x
topology: tpu7x:2x2x1
jax: 0.10.0
libtpu: 0.0.40
codegen_flags: <defaults>
</compile_context>

<pallas_src>
import jax
import jax.numpy as jnp
from jax.experimental import pallas as pl
from jax.experimental.pallas import tpu as pltpu

LEAKY_SLOPE = 0.01   # nn.LeakyReLU default
BN_EPS = 1e-5        # nn.BatchNorm1d default
NORM_EPS = 1e-12     # F.normalize default

# Per-layer "apply LeakyReLU after this Linear?" masks.
#   online: encoder L1,L2 (+act), L3, projector L1 (+act), L2,
#           predictor L1 (+act), L2
#   target: encoder L1,L2 (+act), L3, projector L1 (+act), L2
ONLINE_ACTS = (True, True, False, True, False, True, False)
TARGET_ACTS = (True, True, False, True, False)


# ---------------------------------------------------------------------------
# In-kernel helpers
# ---------------------------------------------------------------------------
def _l2_normalize(a):
    # F.normalize: x / max(||x||, eps) == x * rsqrt(max(||x||^2, eps^2))
    ss = jnp.sum(a * a, axis=-1, keepdims=True)
    return a * jax.lax.rsqrt(jnp.maximum(ss, NORM_EPS * NORM_EPS))


def _run_chain(x_bf16, wb_refs, acts, capture_idx=None):
    """Fused Linear(+folded-BN)(+LeakyReLU) chain.

    Activations are carried in bf16 between layers; each matmul accumulates in
    f32 and bias + LeakyReLU happen in f32.  `capture_idx` returns the f32
    output of that layer (used for the encoder latent)."""
    h = x_bf16
    captured = None
    n = len(acts)
    for i, act in enumerate(acts):
        w = wb_refs[2 * i][...]          # bf16 (in, out)
        b = wb_refs[2 * i + 1][...]      # f32  (1, out)
        y = jnp.dot(h, w, preferred_element_type=jnp.float32) + b
        if act:
            y = jnp.maximum(y, LEAKY_SLOPE * y)          # LeakyReLU
        if i == capture_idx:
            captured = y
        h = y.astype(jnp.bfloat16) if i + 1 < n else y   # last layer stays f32
    return h, captured


# ---------------------------------------------------------------------------
# The fused kernel: whole BYOL forward + loss in one launch
# ---------------------------------------------------------------------------
def _byol_fused_kernel(x_ref, *refs):
    online_wb = refs[0:14]     # 7 layers * (w, b)
    target_wb = refs[14:24]    # 5 layers * (w, b)
    latent_ref = refs[24]      # (B, nlatent) f32 VMEM
    loss_ref = refs[25]        # (1, 1) f32 SMEM

    B = latent_ref.shape[0]                      # static
    x = x_ref[...].astype(jnp.bfloat16)          # stacked rows: [x ; xt]

    # ---- online path: encoder -> projector -> predictor (Dropout = id) ----
    z_on, latent = _run_chain(x, online_wb, ONLINE_ACTS, capture_idx=2)
    latent_ref[...] = latent[:B]                 # only the x-branch latent is live

    # ---- target path (torch.no_grad()): encoder -> projector --------------
    z_tg, _ = _run_chain(x, target_wb, TARGET_ACTS)

    # ---- BYOL loss; branch swap happens here (rows [0:B]=x, [B:2B]=xt) -----
    zo = _l2_normalize(z_on)
    zt = _l2_normalize(z_tg)
    cos1 = jnp.sum(zo[:B] * zt[B:], axis=-1, keepdims=True)   # (B,1)  z1 pair
    cos2 = jnp.sum(zo[B:] * zt[:B], axis=-1, keepdims=True)   # (B,1)  z2 pair
    loss_ref[0, 0] = (jnp.sum(2.0 - 2.0 * cos1) +
                      jnp.sum(2.0 - 2.0 * cos2)) / B


# ---------------------------------------------------------------------------
# Host-side parameter prep (identical math to Linear -> BatchNorm1d(eval))
# ---------------------------------------------------------------------------
def fold_bn(w, b, bn):
    """Fold eval-mode BatchNorm1d into the preceding Linear (W stored (in,out))."""
    gamma, beta, mean, var = bn
    scale = gamma * jax.lax.rsqrt(var + BN_EPS)
    return w * scale[None, :], (b - mean) * scale + beta


def _pack(layers):
    """[(w,b), ...] -> flat [w_bf16, b_f32_row, ...] list for pallas_call."""
    flat = []
    for w, b in layers:
        flat.append(w.astype(jnp.bfloat16))
        flat.append(b.reshape(1, -1).astype(jnp.float32))
    return flat


# ---------------------------------------------------------------------------
# pallas_call wrapper
# ---------------------------------------------------------------------------
def byol_fused(params, x_stack):
    """Fused BYOL forward on stacked (2B, indim) input -> (latent, loss[1,1])."""
    B2, _ = x_stack.shape
    B = B2 // 2

    oe = params['online_encoder']
    op_ = params['online_projector']
    oq = params['online_predictor']
    te = params['target_encoder']
    tp = params['target_projector']

    online_layers = [fold_bn(*oe['l1'], oe['bn1']),
                     fold_bn(*oe['l2'], oe['bn2']),
                     oe['l3'],
                     fold_bn(*op_['l1'], op_['bn1']),
                     op_['l2'],
                     fold_bn(*oq['l1'], oq['bn1']),
                     oq['l2']]
    target_layers = [fold_bn(*te['l1'], te['bn1']),
                     fold_bn(*te['l2'], te['bn2']),
                     te['l3'],
                     fold_bn(*tp['l1'], tp['bn1']),
                     tp['l2']]
    online_wb = _pack(online_layers)
    target_wb = _pack(target_layers)
    nlatent = online_layers[2][0].shape[1]

    operands = [x_stack.astype(jnp.float32)] + online_wb + target_wb

    # Advisory cost for XLA's scheduler.
    flops = 2 * B2 * sum(int(w.shape[0]) * int(w.shape[1])
                         for w, _ in online_layers + target_layers)
    bytes_accessed = (sum(int(a.size) * a.dtype.itemsize for a in operands)
                      + B * nlatent * 4 + 4)
    cost = pl.CostEstimate(flops=flops, transcendentals=4 * B2,
                           bytes_accessed=bytes_accessed)

    # Explicit VMEM budget (resident weights + activations + headroom);
    # kept within v7x's 64 MiB physical VMEM.
    vmem_limit = min(max(4 * bytes_accessed, 16 << 20), 48 << 20)

    out_shape = (jax.ShapeDtypeStruct((B, nlatent), jnp.float32),
                 jax.ShapeDtypeStruct((1, 1), jnp.float32))
    in_specs = [pl.BlockSpec(memory_space=pltpu.MemorySpace.VMEM)] * len(operands)
    out_specs = (pl.BlockSpec(memory_space=pltpu.MemorySpace.VMEM),
                 pl.BlockSpec(memory_space=pltpu.MemorySpace.SMEM))

    latent, loss = pl.pallas_call(
        _byol_fused_kernel,
        in_specs=in_specs,
        out_specs=out_specs,
        out_shape=out_shape,
        compiler_params=pltpu.CompilerParams(vmem_limit_bytes=vmem_limit),
        cost_estimate=cost,
    )(*operands)
    return latent, loss


def byol_forward(params, x, xt):
    """Mirrors BYOLmodel.forward(x, xt, pair=False) -> (latent, byol_loss)."""
    x_stack = jnp.concatenate([x, xt], axis=0)   # single host concat
    latent, loss = byol_fused(params, x_stack)
    return latent, loss[0, 0]


def normalize_counts(counts):
    """Row-mean normalization, matching normalize_counts() in the module."""
    return counts / jnp.mean(counts, axis=1, keepdims=True)


# ---------------------------------------------------------------------------
# Deterministic parameter init (shapes follow BYOLmodel.__init__ structure)
# ---------------------------------------------------------------------------
def init_linear(key, fan_in, fan_out):
    kw, kb = jax.random.split(key)
    bound = 1.0 / jnp.sqrt(float(fan_in))
    w = jax.random.uniform(kw, (fan_in, fan_out), jnp.float32, -bound, bound)
    b = jax.random.uniform(kb, (fan_out,), jnp.float32, -bound, bound)
    return w, b


def init_bn(key, n):
    k1, k2, k3 = jax.random.split(key, 3)
    gamma = 1.0 + 0.1 * jax.random.normal(k1, (n,), jnp.float32)
    beta = 0.1 * jax.random.normal(k2, (n,), jnp.float32)
    running_mean = 0.1 * jax.random.normal(k3, (n,), jnp.float32)
    running_var = jnp.ones((n,), jnp.float32)
    return gamma, beta, running_mean, running_var


def init_encoder(key, indim, nhidden, nlatent):
    ks = jax.random.split(key, 5)
    return dict(l1=init_linear(ks[0], indim, nhidden), bn1=init_bn(ks[1], nhidden),
                l2=init_linear(ks[2], nhidden, nhidden), bn2=init_bn(ks[3], nhidden),
                l3=init_linear(ks[4], nhidden, nlatent))


def init_mlp(key, dim, projection_size, hidden_size):
    ks = jax.random.split(key, 3)
    return dict(l1=init_linear(ks[0], dim, hidden_size), bn1=init_bn(ks[1], hidden_size),
                l2=init_linear(ks[2], hidden_size, projection_size))


# ---------------------------------------------------------------------------
# main
# ---------------------------------------------------------------------------
if __name__ == "__main__":
    # Small, lane-friendly dims (scaled-down versions of 1024/512/256/4096).
    B = 16               # batch
    NSAMPLES = 24        # abundance-matrix samples
    KMER_DIM = 104       # kmer feature width  -> indim = 24 + 104 = 128
    INDIM = NSAMPLES + KMER_DIM
    NHIDDEN = 256
    NLATENT = 128
    PROJ_SIZE = 128
    PROJ_HIDDEN = 512

    key = jax.random.PRNGKey(0)
    k_param, k_data = jax.random.split(key)

    kp = jax.random.split(k_param, 5)
    params = dict(
        online_encoder=init_encoder(kp[0], INDIM, NHIDDEN, NLATENT),
        online_projector=init_mlp(kp[1], NLATENT, PROJ_SIZE, PROJ_HIDDEN),
        online_predictor=init_mlp(kp[2], PROJ_SIZE, PROJ_SIZE, PROJ_HIDDEN),
        target_encoder=init_encoder(kp[3], INDIM, NHIDDEN, NLATENT),
        target_projector=init_mlp(kp[4], NLATENT, PROJ_SIZE, PROJ_HIDDEN),
    )

    # Build x / xt the way process_batches does: concat(normalized counts, kmer).
    kd = jax.random.split(k_data, 4)
    abundance = jax.random.uniform(kd[0], (B, NSAMPLES), jnp.float32, 0.1, 5.0)
    abundance_aug = jax.random.uniform(kd[1], (B, NSAMPLES), jnp.float32, 0.1, 5.0)
    kmer_online = jax.random.uniform(kd[2], (B, KMER_DIM), jnp.float32, 0.0, 1.0)
    kmer_target = jax.random.uniform(kd[3], (B, KMER_DIM), jnp.float32, 0.0, 1.0)
    x = jnp.concatenate([normalize_counts(abundance), kmer_online], axis=1)
    xt = jnp.concatenate([normalize_counts(abundance_aug), kmer_target], axis=1)

    fwd = jax.jit(byol_forward)
    latent, loss = fwd(params, x, xt)
    jax.block_until_ready((latent, loss))

    assert latent.shape == (B, NLATENT) and latent.dtype == jnp.float32
    assert loss.shape == () and bool(jnp.isfinite(loss))
    print("KERNEL_OK")
</pallas_src>

<mosaic_0001>
module attributes {stable_mosaic.version = 11 : i64} {
  func.func @_byol_fused_kernel(%arg0: memref<32x128xf32, #tpu.memory_space<vmem>>, %arg1: memref<128x256xbf16, #tpu.memory_space<vmem>>, %arg2: memref<1x256xf32, #tpu.memory_space<vmem>>, %arg3: memref<256x256xbf16, #tpu.memory_space<vmem>>, %arg4: memref<1x256xf32, #tpu.memory_space<vmem>>, %arg5: memref<256x128xbf16, #tpu.memory_space<vmem>>, %arg6: memref<1x128xf32, #tpu.memory_space<vmem>>, %arg7: memref<128x512xbf16, #tpu.memory_space<vmem>>, %arg8: memref<1x512xf32, #tpu.memory_space<vmem>>, %arg9: memref<512x128xbf16, #tpu.memory_space<vmem>>, %arg10: memref<1x128xf32, #tpu.memory_space<vmem>>, %arg11: memref<128x512xbf16, #tpu.memory_space<vmem>>, %arg12: memref<1x512xf32, #tpu.memory_space<vmem>>, %arg13: memref<512x128xbf16, #tpu.memory_space<vmem>>, %arg14: memref<1x128xf32, #tpu.memory_space<vmem>>, %arg15: memref<128x256xbf16, #tpu.memory_space<vmem>>, %arg16: memref<1x256xf32, #tpu.memory_space<vmem>>, %arg17: memref<256x256xbf16, #tpu.memory_space<vmem>>, %arg18: memref<1x256xf32, #tpu.memory_space<vmem>>, %arg19: memref<256x128xbf16, #tpu.memory_space<vmem>>, %arg20: memref<1x128xf32, #tpu.memory_space<vmem>>, %arg21: memref<128x512xbf16, #tpu.memory_space<vmem>>, %arg22: memref<1x512xf32, #tpu.memory_space<vmem>>, %arg23: memref<512x128xbf16, #tpu.memory_space<vmem>>, %arg24: memref<1x128xf32, #tpu.memory_space<vmem>>, %arg25: memref<16x128xf32, #tpu.memory_space<vmem>>, %arg26: memref<1x1xf32, #tpu.memory_space<smem>>) attributes {dimension_semantics = [], scalar_prefetch = 0 : i64, scratch_operands = 0 : i64, tpu.core_type = #tpu.core_type<tc>} {
    %c0 = arith.constant 0 : index
    %c0_0 = arith.constant 0 : index
    %0 = vector.load %arg0[%c0, %c0_0] : memref<32x128xf32, #tpu.memory_space<vmem>>, vector<32x128xf32>
    %1 = arith.truncf %0 : vector<32x128xf32> to vector<32x128xbf16>
    %c0_1 = arith.constant 0 : index
    %c0_2 = arith.constant 0 : index
    %2 = vector.load %arg1[%c0_1, %c0_2] : memref<128x256xbf16, #tpu.memory_space<vmem>>, vector<128x256xbf16>
    %c0_3 = arith.constant 0 : index
    %c0_4 = arith.constant 0 : index
    %3 = vector.load %arg2[%c0_3, %c0_4] : memref<1x256xf32, #tpu.memory_space<vmem>>, vector<1x256xf32>
    %cst = arith.constant dense<0.000000e+00> : vector<32x256xf32>
    %4 = tpu.matmul %1, %2, %cst {dimension_numbers = #tpu.dot_dimension_numbers<[1], [0], [0], [1], [0, 0, 1, 1], [], []>} : vector<32x128xbf16>, vector<128x256xbf16>, vector<32x256xf32> -> vector<32x256xf32>
    %5 = vector.broadcast %3 : vector<1x256xf32> to vector<32x256xf32>
    %6 = arith.addf %4, %5 : vector<32x256xf32>
    %cst_5 = arith.constant 0.00999999977 : f32
    %7 = vector.broadcast %cst_5 : f32 to vector<32x256xf32>
    %8 = arith.mulf %7, %6 : vector<32x256xf32>
    %9 = arith.maximumf %6, %8 : vector<32x256xf32>
    %10 = arith.truncf %9 : vector<32x256xf32> to vector<32x256xbf16>
    %c0_6 = arith.constant 0 : index
    %c0_7 = arith.constant 0 : index
    %11 = vector.load %arg3[%c0_6, %c0_7] : memref<256x256xbf16, #tpu.memory_space<vmem>>, vector<256x256xbf16>
    %c0_8 = arith.constant 0 : index
    %c0_9 = arith.constant 0 : index
    %12 = vector.load %arg4[%c0_8, %c0_9] : memref<1x256xf32, #tpu.memory_space<vmem>>, vector<1x256xf32>
    %cst_10 = arith.constant dense<0.000000e+00> : vector<32x256xf32>
    %13 = tpu.matmul %10, %11, %cst_10 {dimension_numbers = #tpu.dot_dimension_numbers<[1], [0], [0], [1], [0, 0, 1, 1], [], []>} : vector<32x256xbf16>, vector<256x256xbf16>, vector<32x256xf32> -> vector<32x256xf32>
    %14 = vector.broadcast %12 : vector<1x256xf32> to vector<32x256xf32>
    %15 = arith.addf %13, %14 : vector<32x256xf32>
    %cst_11 = arith.constant 0.00999999977 : f32
    %16 = vector.broadcast %cst_11 : f32 to vector<32x256xf32>
    %17 = arith.mulf %16, %15 : vector<32x256xf32>
    %18 = arith.maximumf %15, %17 : vector<32x256xf32>
    %19 = arith.truncf %18 : vector<32x256xf32> to vector<32x256xbf16>
    %c0_12 = arith.constant 0 : index
    %c0_13 = arith.constant 0 : index
    %20 = vector.load %arg5[%c0_12, %c0_13] : memref<256x128xbf16, #tpu.memory_space<vmem>>, vector<256x128xbf16>
    %c0_14 = arith.constant 0 : index
    %c0_15 = arith.constant 0 : index
    %21 = vector.load %arg6[%c0_14, %c0_15] : memref<1x128xf32, #tpu.memory_space<vmem>>, vector<1x128xf32>
    %cst_16 = arith.constant dense<0.000000e+00> : vector<32x128xf32>
    %22 = tpu.matmul %19, %20, %cst_16 {dimension_numbers = #tpu.dot_dimension_numbers<[1], [0], [0], [1], [0, 0, 1, 1], [], []>} : vector<32x256xbf16>, vector<256x128xbf16>, vector<32x128xf32> -> vector<32x128xf32>
    %23 = vector.broadcast %21 : vector<1x128xf32> to vector<32x128xf32>
    %24 = arith.addf %22, %23 : vector<32x128xf32>
    %25 = arith.truncf %24 : vector<32x128xf32> to vector<32x128xbf16>
    %c0_17 = arith.constant 0 : index
    %c0_18 = arith.constant 0 : index
    %26 = vector.load %arg7[%c0_17, %c0_18] : memref<128x512xbf16, #tpu.memory_space<vmem>>, vector<128x512xbf16>
    %c0_19 = arith.constant 0 : index
    %c0_20 = arith.constant 0 : index
    %27 = vector.load %arg8[%c0_19, %c0_20] : memref<1x512xf32, #tpu.memory_space<vmem>>, vector<1x512xf32>
    %cst_21 = arith.constant dense<0.000000e+00> : vector<32x512xf32>
    %28 = tpu.matmul %25, %26, %cst_21 {dimension_numbers = #tpu.dot_dimension_numbers<[1], [0], [0], [1], [0, 0, 1, 1], [], []>} : vector<32x128xbf16>, vector<128x512xbf16>, vector<32x512xf32> -> vector<32x512xf32>
    %29 = vector.broadcast %27 : vector<1x512xf32> to vector<32x512xf32>
    %30 = arith.addf %28, %29 : vector<32x512xf32>
    %cst_22 = arith.constant 0.00999999977 : f32
    %31 = vector.broadcast %cst_22 : f32 to vector<32x512xf32>
    %32 = arith.mulf %31, %30 : vector<32x512xf32>
    %33 = arith.maximumf %30, %32 : vector<32x512xf32>
    %34 = arith.truncf %33 : vector<32x512xf32> to vector<32x512xbf16>
    %c0_23 = arith.constant 0 : index
    %c0_24 = arith.constant 0 : index
    %35 = vector.load %arg9[%c0_23, %c0_24] : memref<512x128xbf16, #tpu.memory_space<vmem>>, vector<512x128xbf16>
    %c0_25 = arith.constant 0 : index
    %c0_26 = arith.constant 0 : index
    %36 = vector.load %arg10[%c0_25, %c0_26] : memref<1x128xf32, #tpu.memory_space<vmem>>, vector<1x128xf32>
    %cst_27 = arith.constant dense<0.000000e+00> : vector<32x128xf32>
    %37 = tpu.matmul %34, %35, %cst_27 {dimension_numbers = #tpu.dot_dimension_numbers<[1], [0], [0], [1], [0, 0, 1, 1], [], []>} : vector<32x512xbf16>, vector<512x128xbf16>, vector<32x128xf32> -> vector<32x128xf32>
    %38 = vector.broadcast %36 : vector<1x128xf32> to vector<32x128xf32>
    %39 = arith.addf %37, %38 : vector<32x128xf32>
    %40 = arith.truncf %39 : vector<32x128xf32> to vector<32x128xbf16>
    %c0_28 = arith.constant 0 : index
    %c0_29 = arith.constant 0 : index
    %41 = vector.load %arg11[%c0_28, %c0_29] : memref<128x512xbf16, #tpu.memory_space<vmem>>, vector<128x512xbf16>
    %c0_30 = arith.constant 0 : index
    %c0_31 = arith.constant 0 : index
    %42 = vector.load %arg12[%c0_30, %c0_31] : memref<1x512xf32, #tpu.memory_space<vmem>>, vector<1x512xf32>
    %cst_32 = arith.constant dense<0.000000e+00> : vector<32x512xf32>
    %43 = tpu.matmul %40, %41, %cst_32 {dimension_numbers = #tpu.dot_dimension_numbers<[1], [0], [0], [1], [0, 0, 1, 1], [], []>} : vector<32x128xbf16>, vector<128x512xbf16>, vector<32x512xf32> -> vector<32x512xf32>
    %44 = vector.broadcast %42 : vector<1x512xf32> to vector<32x512xf32>
    %45 = arith.addf %43, %44 : vector<32x512xf32>
    %cst_33 = arith.constant 0.00999999977 : f32
    %46 = vector.broadcast %cst_33 : f32 to vector<32x512xf32>
    %47 = arith.mulf %46, %45 : vector<32x512xf32>
    %48 = arith.maximumf %45, %47 : vector<32x512xf32>
    %49 = arith.truncf %48 : vector<32x512xf32> to vector<32x512xbf16>
    %c0_34 = arith.constant 0 : index
    %c0_35 = arith.constant 0 : index
    %50 = vector.load %arg13[%c0_34, %c0_35] : memref<512x128xbf16, #tpu.memory_space<vmem>>, vector<512x128xbf16>
    %c0_36 = arith.constant 0 : index
    %c0_37 = arith.constant 0 : index
    %51 = vector.load %arg14[%c0_36, %c0_37] : memref<1x128xf32, #tpu.memory_space<vmem>>, vector<1x128xf32>
    %cst_38 = arith.constant dense<0.000000e+00> : vector<32x128xf32>
    %52 = tpu.matmul %49, %50, %cst_38 {dimension_numbers = #tpu.dot_dimension_numbers<[1], [0], [0], [1], [0, 0, 1, 1], [], []>} : vector<32x512xbf16>, vector<512x128xbf16>, vector<32x128xf32> -> vector<32x128xf32>
    %53 = vector.broadcast %51 : vector<1x128xf32> to vector<32x128xf32>
    %54 = arith.addf %52, %53 : vector<32x128xf32>
    %55 = vector.extract_strided_slice %24 {offsets = [0, 0], sizes = [16, 128], strides = [1, 1]} : vector<32x128xf32> to vector<16x128xf32>
    %c0_39 = arith.constant 0 : index
    %c0_40 = arith.constant 0 : index
    %56 = vector.load %arg25[%c0_39, %c0_40] : memref<16x128xf32, #tpu.memory_space<vmem>>, vector<16x128xf32>
    tpu.vector_store %arg25[%c0_39, %c0_40], %55 {strides = array<i32>} : memref<16x128xf32, #tpu.memory_space<vmem>>, vector<16x128xf32>,
    %c0_41 = arith.constant 0 : index
    %c0_42 = arith.constant 0 : index
    %57 = vector.load %arg15[%c0_41, %c0_42] : memref<128x256xbf16, #tpu.memory_space<vmem>>, vector<128x256xbf16>
    %c0_43 = arith.constant 0 : index
    %c0_44 = arith.constant 0 : index
    %58 = vector.load %arg16[%c0_43, %c0_44] : memref<1x256xf32, #tpu.memory_space<vmem>>, vector<1x256xf32>
    %cst_45 = arith.constant dense<0.000000e+00> : vector<32x256xf32>
    %59 = tpu.matmul %1, %57, %cst_45 {dimension_numbers = #tpu.dot_dimension_numbers<[1], [0], [0], [1], [0, 0, 1, 1], [], []>} : vector<32x128xbf16>, vector<128x256xbf16>, vector<32x256xf32> -> vector<32x256xf32>
    %60 = vector.broadcast %58 : vector<1x256xf32> to vector<32x256xf32>
    %61 = arith.addf %59, %60 : vector<32x256xf32>
    %cst_46 = arith.constant 0.00999999977 : f32
    %62 = vector.broadcast %cst_46 : f32 to vector<32x256xf32>
    %63 = arith.mulf %62, %61 : vector<32x256xf32>
    %64 = arith.maximumf %61, %63 : vector<32x256xf32>
    %65 = arith.truncf %64 : vector<32x256xf32> to vector<32x256xbf16>
    %c0_47 = arith.constant 0 : index
    %c0_48 = arith.constant 0 : index
    %66 = vector.load %arg17[%c0_47, %c0_48] : memref<256x256xbf16, #tpu.memory_space<vmem>>, vector<256x256xbf16>
    %c0_49 = arith.constant 0 : index
    %c0_50 = arith.constant 0 : index
    %67 = vector.load %arg18[%c0_49, %c0_50] : memref<1x256xf32, #tpu.memory_space<vmem>>, vector<1x256xf32>
    %cst_51 = arith.constant dense<0.000000e+00> : vector<32x256xf32>
    %68 = tpu.matmul %65, %66, %cst_51 {dimension_numbers = #tpu.dot_dimension_numbers<[1], [0], [0], [1], [0, 0, 1, 1], [], []>} : vector<32x256xbf16>, vector<256x256xbf16>, vector<32x256xf32> -> vector<32x256xf32>
    %69 = vector.broadcast %67 : vector<1x256xf32> to vector<32x256xf32>
    %70 = arith.addf %68, %69 : vector<32x256xf32>
    %cst_52 = arith.constant 0.00999999977 : f32
    %71 = vector.broadcast %cst_52 : f32 to vector<32x256xf32>
    %72 = arith.mulf %71, %70 : vector<32x256xf32>
    %73 = arith.maximumf %70, %72 : vector<32x256xf32>
    %74 = arith.truncf %73 : vector<32x256xf32> to vector<32x256xbf16>
    %c0_53 = arith.constant 0 : index
    %c0_54 = arith.constant 0 : index
    %75 = vector.load %arg19[%c0_53, %c0_54] : memref<256x128xbf16, #tpu.memory_space<vmem>>, vector<256x128xbf16>
    %c0_55 = arith.constant 0 : index
    %c0_56 = arith.constant 0 : index
    %76 = vector.load %arg20[%c0_55, %c0_56] : memref<1x128xf32, #tpu.memory_space<vmem>>, vector<1x128xf32>
    %cst_57 = arith.constant dense<0.000000e+00> : vector<32x128xf32>
    %77 = tpu.matmul %74, %75, %cst_57 {dimension_numbers = #tpu.dot_dimension_numbers<[1], [0], [0], [1], [0, 0, 1, 1], [], []>} : vector<32x256xbf16>, vector<256x128xbf16>, vector<32x128xf32> -> vector<32x128xf32>
    %78 = vector.broadcast %76 : vector<1x128xf32> to vector<32x128xf32>
    %79 = arith.addf %77, %78 : vector<32x128xf32>
    %80 = arith.truncf %79 : vector<32x128xf32> to vector<32x128xbf16>
    %c0_58 = arith.constant 0 : index
    %c0_59 = arith.constant 0 : index
    %81 = vector.load %arg21[%c0_58, %c0_59] : memref<128x512xbf16, #tpu.memory_space<vmem>>, vector<128x512xbf16>
    %c0_60 = arith.constant 0 : index
    %c0_61 = arith.constant 0 : index
    %82 = vector.load %arg22[%c0_60, %c0_61] : memref<1x512xf32, #tpu.memory_space<vmem>>, vector<1x512xf32>
    %cst_62 = arith.constant dense<0.000000e+00> : vector<32x512xf32>
    %83 = tpu.matmul %80, %81, %cst_62 {dimension_numbers = #tpu.dot_dimension_numbers<[1], [0], [0], [1], [0, 0, 1, 1], [], []>} : vector<32x128xbf16>, vector<128x512xbf16>, vector<32x512xf32> -> vector<32x512xf32>
    %84 = vector.broadcast %82 : vector<1x512xf32> to vector<32x512xf32>
    %85 = arith.addf %83, %84 : vector<32x512xf32>
    %cst_63 = arith.constant 0.00999999977 : f32
    %86 = vector.broadcast %cst_63 : f32 to vector<32x512xf32>
    %87 = arith.mulf %86, %85 : vector<32x512xf32>
    %88 = arith.maximumf %85, %87 : vector<32x512xf32>
    %89 = arith.truncf %88 : vector<32x512xf32> to vector<32x512xbf16>
    %c0_64 = arith.constant 0 : index
    %c0_65 = arith.constant 0 : index
    %90 = vector.load %arg23[%c0_64, %c0_65] : memref<512x128xbf16, #tpu.memory_space<vmem>>, vector<512x128xbf16>
    %c0_66 = arith.constant 0 : index
    %c0_67 = arith.constant 0 : index
    %91 = vector.load %arg24[%c0_66, %c0_67] : memref<1x128xf32, #tpu.memory_space<vmem>>, vector<1x128xf32>
    %cst_68 = arith.constant dense<0.000000e+00> : vector<32x128xf32>
    %92 = tpu.matmul %89, %90, %cst_68 {dimension_numbers = #tpu.dot_dimension_numbers<[1], [0], [0], [1], [0, 0, 1, 1], [], []>} : vector<32x512xbf16>, vector<512x128xbf16>, vector<32x128xf32> -> vector<32x128xf32>
    %93 = vector.broadcast %91 : vector<1x128xf32> to vector<32x128xf32>
    %94 = arith.addf %92, %93 : vector<32x128xf32>
    %95 = arith.mulf %54, %54 : vector<32x128xf32>
    %cst_69 = arith.constant dense<0.000000e+00> : vector<32xf32>
    %96 = vector.multi_reduction <add>, %95, %cst_69 [1] : vector<32x128xf32> to vector<32xf32>
    %97 = vector.shape_cast %96 : vector<32xf32> to vector<32x1xf32>
    %cst_70 = arith.constant 1.000000e-24 : f32
    %98 = vector.broadcast %cst_70 : f32 to vector<32x1xf32>
    %99 = arith.maximumf %97, %98 : vector<32x1xf32>
    %100 = math.rsqrt %99 : vector<32x1xf32>
    %101 = vector.broadcast %100 : vector<32x1xf32> to vector<32x128xf32>
    %102 = arith.mulf %54, %101 : vector<32x128xf32>
    %103 = arith.mulf %94, %94 : vector<32x128xf32>
    %cst_71 = arith.constant dense<0.000000e+00> : vector<32xf32>
    %104 = vector.multi_reduction <add>, %103, %cst_71 [1] : vector<32x128xf32> to vector<32xf32>
    %105 = vector.shape_cast %104 : vector<32xf32> to vector<32x1xf32>
    %cst_72 = arith.constant 1.000000e-24 : f32
    %106 = vector.broadcast %cst_72 : f32 to vector<32x1xf32>
    %107 = arith.maximumf %105, %106 : vector<32x1xf32>
    %108 = math.rsqrt %107 : vector<32x1xf32>
    %109 = vector.broadcast %108 : vector<32x1xf32> to vector<32x128xf32>
    %110 = arith.mulf %94, %109 : vector<32x128xf32>
    %111 = vector.extract_strided_slice %102 {offsets = [0, 0], sizes = [16, 128], strides = [1, 1]} : vector<32x128xf32> to vector<16x128xf32>
    %112 = vector.extract_strided_slice %110 {offsets = [16, 0], sizes = [16, 128], strides = [1, 1]} : vector<32x128xf32> to vector<16x128xf32>
    %113 = arith.mulf %111, %112 : vector<16x128xf32>
    %cst_73 = arith.constant dense<0.000000e+00> : vector<16xf32>
    %114 = vector.multi_reduction <add>, %113, %cst_73 [1] : vector<16x128xf32> to vector<16xf32>
    %115 = vector.shape_cast %114 : vector<16xf32> to vector<16x1xf32>
    %116 = vector.extract_strided_slice %102 {offsets = [16, 0], sizes = [16, 128], strides = [1, 1]} : vector<32x128xf32> to vector<16x128xf32>
    %117 = vector.extract_strided_slice %110 {offsets = [0, 0], sizes = [16, 128], strides = [1, 1]} : vector<32x128xf32> to vector<16x128xf32>
    %118 = arith.mulf %116, %117 : vector<16x128xf32>
    %cst_74 = arith.constant dense<0.000000e+00> : vector<16xf32>
    %119 = vector.multi_reduction <add>, %118, %cst_74 [1] : vector<16x128xf32> to vector<16xf32>
    %120 = vector.shape_cast %119 : vector<16xf32> to vector<16x1xf32>
    %cst_75 = arith.constant 2.000000e+00 : f32
    %121 = vector.broadcast %cst_75 : f32 to vector<16x1xf32>
    %122 = arith.mulf %121, %115 : vector<16x1xf32>
    %cst_76 = arith.constant 2.000000e+00 : f32
    %123 = vector.broadcast %cst_76 : f32 to vector<16x1xf32>
    %124 = arith.subf %123, %122 : vector<16x1xf32>
    %125 = vector.shape_cast %124 : vector<16x1xf32> to vector<1x16x1xf32>
    %cst_77 = arith.constant dense<0.000000e+00> : vector<1xf32>
    %126 = vector.multi_reduction <add>, %125, %cst_77 [1, 2] : vector<1x16x1xf32> to vector<1xf32>
    %127 = vector.shape_cast %126 : vector<1xf32> to vector<1x1x1xf32>
    %128 = vector.extract %127[0, 0, 0] : f32 from vector<1x1x1xf32>
    %cst_78 = arith.constant 2.000000e+00 : f32
    %129 = vector.broadcast %cst_78 : f32 to vector<16x1xf32>
    %130 = arith.mulf %129, %120 : vector<16x1xf32>
    %cst_79 = arith.constant 2.000000e+00 : f32
    %131 = vector.broadcast %cst_79 : f32 to vector<16x1xf32>
    %132 = arith.subf %131, %130 : vector<16x1xf32>
    %133 = vector.shape_cast %132 : vector<16x1xf32> to vector<1x16x1xf32>
    %cst_80 = arith.constant dense<0.000000e+00> : vector<1xf32>
    %134 = vector.multi_reduction <add>, %133, %cst_80 [1, 2] : vector<1x16x1xf32> to vector<1xf32>
    %135 = vector.shape_cast %134 : vector<1xf32> to vector<1x1x1xf32>
    %136 = vector.extract %135[0, 0, 0] : f32 from vector<1x1x1xf32>
    %137 = arith.addf %128, %136 : f32
    %cst_81 = arith.constant 1.600000e+01 : f32
    %138 = arith.divf %137, %cst_81 : f32
    %c0_82 = arith.constant 0 : index
    %c0_83 = arith.constant 0 : index
    %139 = memref.load %arg26[%c0_82, %c0_83] : memref<1x1xf32, #tpu.memory_space<smem>>
    memref.store %138, %arg26[%c0_82, %c0_83] : memref<1x1xf32, #tpu.memory_space<smem>>
    return
  }
}

</mosaic_0001>

<bundles_post_ra>
// kernel: byol_forward.1
= control target key start
LH: loop header
LB: loop body
LE: loop exit
PB: predicated region body
PF: predicated region fallthrough
CT: control target
= control target key end

     0   :  { %s5960_s0 = inlined_call_operand.vmem [shape: f32[32,128], index: 0, kind: input, shape index: {}]   ;;  %s5961_s1 = inlined_call_operand.vmem [shape: bf16[128,256], index: 1, kind: input, shape index: {}]   ;;  %s5962_s2 = inlined_call_operand.vmem [shape: f32[1,256], index: 2, kind: input, shape index: {}]   ;;  %s5963_s3 = inlined_call_operand.vmem [shape: bf16[256,256], index: 3, kind: input, shape index: {}]   ;;  %s5964_s4 = inlined_call_operand.vmem [shape: f32[1,256], index: 4, kind: input, shape index: {}]   ;;  %s5965_s5 = inlined_call_operand.vmem [shape: bf16[256,128], index: 5, kind: input, shape index: {}]   ;;  %s5966_s6 = inlined_call_operand.vmem [shape: f32[1,128], index: 6, kind: input, shape index: {}]   ;;  %s5967_s7 = inlined_call_operand.vmem [shape: bf16[128,512], index: 7, kind: input, shape index: {}]   ;;  %s5968_s8 = inlined_call_operand.vmem [shape: f32[1,512], index: 8, kind: input, shape index: {}]   ;;  %s5969_s9 = inlined_call_operand.vmem [shape: bf16[512,128], index: 9, kind: input, shape index: {}]   ;;  %s5970_s10 = inlined_call_operand.vmem [shape: f32[1,128], index: 10, kind: input, shape index: {}]   ;;  %s5971_s11 = inlined_call_operand.vmem [shape: bf16[128,512], index: 11, kind: input, shape index: {}]   ;;  %s5972_s12 = inlined_call_operand.vmem [shape: f32[1,512], index: 12, kind: input, shape index: {}]   ;;  %s5973_s13 = inlined_call_operand.vmem [shape: bf16[512,128], index: 13, kind: input, shape index: {}]   ;;  %s5974_s14 = inlined_call_operand.vmem [shape: f32[1,128], index: 14, kind: input, shape index: {}]   ;;  %s5975_s15 = inlined_call_operand.vmem [shape: bf16[128,256], index: 15, kind: input, shape index: {}]   ;;  %s5976_s16 = inlined_call_operand.vmem [shape: f32[1,256], index: 16, kind: input, shape index: {}]   ;;  %s5977_s17 = inlined_call_operand.vmem [shape: bf16[256,256], index: 17, kind: input, shape index: {}]   ;;  %s5978_s18 = inlined_call_operand.vmem [shape: f32[1,256], index: 18, kind: input, shape index: {}]   ;;  %s5979_s19 = inlined_call_operand.vmem [shape: bf16[256,128], index: 19, kind: input, shape index: {}]   ;;  %s5980_s20 = inlined_call_operand.vmem [shape: f32[1,128], index: 20, kind: input, shape index: {}]   ;;  %s5981_s21 = inlined_call_operand.vmem [shape: bf16[128,512], index: 21, kind: input, shape index: {}]   ;;  %s5982_s22 = inlined_call_operand.vmem [shape: f32[1,512], index: 22, kind: input, shape index: {}]   ;;  %s5983_s23 = inlined_call_operand.vmem [shape: bf16[512,128], index: 23, kind: input, shape index: {}]   ;;  %s5984_s24 = inlined_call_operand.vmem [shape: f32[1,128], index: 24, kind: input, shape index: {}]   ;;  %s5985_s25 = inlined_call_operand.hbm [shape: f32[16,128], index: 25, kind: output, shape index: {0}]   ;;  %s5986_s26 = inlined_call_operand.hbm [shape: f32[1,1], index: 26, kind: output, shape index: {1}]  }
   0x1   :  { %5993 = sst [smem:[#allocation8_spill]] %s5960_s0 }
   0x2   :  { %5994 = sst [smem:[#allocation9_spill]] %s5961_s1 }
   0x3   :  { %5995 = sst [smem:[#allocation10_spill]] %s5962_s2 }
   0x4   :  { %5996 = sst [smem:[#allocation11_spill]] %s5963_s3 }
   0x5   :  { %5997 = sst [smem:[#allocation12_spill]] %s5964_s4 }
   0x6   :  { %5998 = sst [smem:[#allocation13_spill]] %s5965_s5 }
   0x7   :  { %5999 = sst [smem:[#allocation14_spill]] %s5966_s6 }
   0x8   :  { %6000 = sst [smem:[#allocation15_spill]] %s5967_s7 }
   0x9   :  { %6001 = sst [smem:[#allocation16_spill]] %s5968_s8 }
   0xa   :  { %6002 = sst [smem:[#allocation17_spill]] %s5969_s9 }
   0xb   :  { %6003 = sst [smem:[#allocation18_spill]] %s5970_s10 }
   0xc   :  { %32 = vsyncpa [#allocation3], 0  ;;  %s6004_s7 = sld [smem:[#allocation9_spill]]  ;;  %v4700_v2 = vmov 0   ;;  %s6005_s0 = sld [smem:[#allocation11_spill]] }
   0xd   :  { %231 = vmatprep.mubr.bf16.mxu0 %v4700_v2  ;;  %s6006_s1 = sld [smem:[#allocation8_spill]]  ;;  %s6007_s6 = sld [smem:[#allocation13_spill]] }
  0x12   :  { %v4232_v0 = vld [vmem:[%s6004_s7 + $0x4] ss:$8 sps:$4 sm:$0xff]   ;;  %v4234_v1 = vld [vmem:[%s6004_s7] ss:$8 sps:$4 sm:$0xff]   ;;  %v4235_v3 = vld [vmem:[%s6004_s7 + $0x14] ss:$8 sps:$4 sm:$0xff]  }
  0x13   :  { %199 = vmatprep.subr.bf16.mxu0 %v4232_v0  ;;  %v4237_v4 = vld [vmem:[%s6004_s7 + $0x10] ss:$8 sps:$4 sm:$0xff]   ;;  %v4238_v5 = vld [vmem:[%s6004_s7 + $0x24] ss:$8 sps:$4 sm:$0xff]   ;;  %v4240_v6 = vld [vmem:[%s6004_s7 + $0x20] ss:$8 sps:$4 sm:$0xff]  }
  0x14   :  { %200 = vmatpush1.bf16.msra.mxu0 %v4234_v1  ;;  %v4241_v7 = vld [vmem:[%s6004_s7 + $0x34] ss:$8 sps:$4 sm:$0xff]   ;;  %v4243_v8 = vld [vmem:[%s6004_s7 + $0x30] ss:$8 sps:$4 sm:$0xff]   ;;  %v4244_v9 = vld [vmem:[%s6004_s7 + $0x44] ss:$8 sps:$4 sm:$0xff]  }
  0x15   :  { %201 = vmatprep.subr.bf16.mxu0 %v4235_v3  ;;  %v4256_v10 = vld [vmem:[%s6005_s0 + $0x4] ss:$8 sps:$4 sm:$0xff]   ;;  %v4258_v11 = vld [vmem:[%s6005_s0] ss:$8 sps:$4 sm:$0xff]   ;;  %v4259_v13 = vld [vmem:[%s6005_s0 + $0x14] ss:$8 sps:$4 sm:$0xff]  }
  0x16   :  { %v4246_v12 = vld [vmem:[%s6004_s7 + $0x40] ss:$8 sps:$4 sm:$0xff]   ;;  %476 = vmatprep.subr.bf16.mxu1 %v4256_v10  ;;  %v4247_v14 = vld [vmem:[%s6004_s7 + $0x54] ss:$8 sps:$4 sm:$0xff]   ;;  %v4261_v15 = vld [vmem:[%s6005_s0 + $0x10] ss:$8 sps:$4 sm:$0xff]  }
  0x17   :  { %477 = vmatpush1.bf16.msra.mxu1 %v4258_v11  ;;  %v4262_v16 = vld [vmem:[%s6005_s0 + $0x24] ss:$8 sps:$4 sm:$0xff]   ;;  %v4249_v17 = vld [vmem:[%s6004_s7 + $0x50] ss:$8 sps:$4 sm:$0xff]   ;;  %v4264_v19 = vld [vmem:[%s6005_s0 + $0x20] ss:$8 sps:$4 sm:$0xff]  }
  0x18   :  { %202 = vmatpush1.bf16.msra.mxu0 %v4237_v4  ;;  %478 = vmatprep.subr.bf16.mxu1 %v4259_v13  ;;  %v4250_v18 = vld [vmem:[%s6004_s7 + $0x64] ss:$8 sps:$4 sm:$0xff]   ;;  %v4265_v20 = vld [vmem:[%s6005_s0 + $0x34] ss:$8 sps:$4 sm:$0xff]   ;;  %v4252_v21 = vld [vmem:[%s6004_s7 + $0x60] ss:$8 sps:$4 sm:$0xff]  }
  0x19   :  { %203 = vmatprep.subr.bf16.mxu0 %v4238_v5  ;;  %v4253_v22 = vld [vmem:[%s6004_s7 + $0x74] ss:$8 sps:$4 sm:$0xff]   ;;  %v4267_v23 = vld [vmem:[%s6005_s0 + $0x30] ss:$8 sps:$4 sm:$0xff]   ;;  %v4268_v24 = vld [vmem:[%s6005_s0 + $0x44] ss:$8 sps:$4 sm:$0xff]  }
  0x1a   :  { %v4255_v25 = vld [vmem:[%s6004_s7 + $0x70] ss:$8 sps:$4 sm:$0xff]   ;;  %v85_v26 = vld [vmem:[%s6006_s1] sm:$0xff]  ;;  %v86_v27 = vld [vmem:[%s6006_s1 + $0x8] sm:$0xff] }
  0x1b   :  { %479 = vmatpush1.bf16.msra.mxu1 %v4261_v15  ;;  %v4270_v28 = vld [vmem:[%s6005_s0 + $0x40] ss:$8 sps:$4 sm:$0xff]   ;;  %v4271_v29 = vld [vmem:[%s6005_s0 + $0x54] ss:$8 sps:$4 sm:$0xff]   ;;  %v4273_v30 = vld [vmem:[%s6005_s0 + $0x50] ss:$8 sps:$4 sm:$0xff]   ;;  %v4931_v31 = vpack.c.bf16 %v86_v27, %v85_v26 }
  0x1c   :  { %204 = vmatpush1.bf16.msra.mxu0 %v4240_v6  ;;  %480 = vmatprep.subr.bf16.mxu1 %v4262_v16  ;;  %v4274_v32 = vld [vmem:[%s6005_s0 + $0x64] ss:$8 sps:$4 sm:$0xff]   ;;  %v87_v33 = vld [vmem:[%s6006_s1 + $0x10] sm:$0xff]  ;;  %v88_v34 = vld [vmem:[%s6006_s1 + $0x18] sm:$0xff] }
  0x1d   :  { %205 = vmatprep.subr.bf16.mxu0 %v4241_v7  ;;  %v4276_v35 = vld [vmem:[%s6005_s0 + $0x60] ss:$8 sps:$4 sm:$0xff]   ;;  %v4277_v36 = vld [vmem:[%s6005_s0 + $0x74] ss:$8 sps:$4 sm:$0xff]   ;;  %v4279_v37 = vld [vmem:[%s6005_s0 + $0x70] ss:$8 sps:$4 sm:$0xff]   ;;  %v4953_v38 = vpack.c.bf16 %v88_v34, %v87_v33 }
  0x1e   :  { %v4280_v39 = vld [vmem:[%s6005_s0 + $0x84] ss:$8 sps:$4 sm:$0xff]   ;;  %v4282_v40 = vld [vmem:[%s6005_s0 + $0x80] ss:$8 sps:$4 sm:$0xff]   ;;  %v4283_v41 = vld [vmem:[%s6005_s0 + $0x94] ss:$8 sps:$4 sm:$0xff]  }
  0x1f   :  { %481 = vmatpush1.bf16.msra.mxu1 %v4264_v19  ;;  %v4285_v42 = vld [vmem:[%s6005_s0 + $0x90] ss:$8 sps:$4 sm:$0xff]   ;;  %v4286_v43 = vld [vmem:[%s6005_s0 + $0xa4] ss:$8 sps:$4 sm:$0xff]   ;;  %v4288_v44 = vld [vmem:[%s6005_s0 + $0xa0] ss:$8 sps:$4 sm:$0xff]  }
  0x20   :  { %206 = vmatpush1.bf16.msra.mxu0 %v4243_v8  ;;  %482 = vmatprep.subr.bf16.mxu1 %v4265_v20  ;;  %v4289_v45 = vld [vmem:[%s6005_s0 + $0xb4] ss:$8 sps:$4 sm:$0xff]   ;;  %v4291_v46 = vld [vmem:[%s6005_s0 + $0xb0] ss:$8 sps:$4 sm:$0xff]   ;;  %v4292_v47 = vld [vmem:[%s6005_s0 + $0xc4] ss:$8 sps:$4 sm:$0xff]  }
  0x21   :  { %207 = vmatprep.subr.bf16.mxu0 %v4244_v9  ;;  %v4294_v48 = vld [vmem:[%s6005_s0 + $0xc0] ss:$8 sps:$4 sm:$0xff]   ;;  %v4295_v49 = vld [vmem:[%s6005_s0 + $0xd4] ss:$8 sps:$4 sm:$0xff]   ;;  %v4297_v50 = vld [vmem:[%s6005_s0 + $0xd0] ss:$8 sps:$4 sm:$0xff]  }
  0x22   :  { %v4298_v51 = vld [vmem:[%s6005_s0 + $0xe4] ss:$8 sps:$4 sm:$0xff]   ;;  %v4300_v52 = vld [vmem:[%s6005_s0 + $0xe0] ss:$8 sps:$4 sm:$0xff]   ;;  %v4301_v53 = vld [vmem:[%s6005_s0 + $0xf4] ss:$8 sps:$4 sm:$0xff]  }
  0x23   :  { %483 = vmatpush1.bf16.msra.mxu1 %v4267_v23  ;;  %v4303_v54 = vld [vmem:[%s6005_s0 + $0xf0] ss:$8 sps:$4 sm:$0xff]   ;;  %v4304_v55 = vld [vmem:[%s6007_s6 + $0x40] sm:$0xff]   ;;  %v4306_v57 = vld [vmem:[%s6007_s6 + $0x48] sm:$0xff]  }
  0x24   :  { %208 = vmatpush1.bf16.msra.mxu0 %v4246_v12  ;;  %484 = vmatprep.subr.bf16.mxu1 %v4268_v24  ;;  %v4305_v56 = vld [vmem:[%s6007_s6] sm:$0xff]   ;;  %v4307_v58 = vld [vmem:[%s6007_s6 + $0x8] sm:$0xff]   ;;  %v4308_v59 = vld [vmem:[%s6007_s6 + $0x50] sm:$0xff]  }
  0x25   :  { %209 = vmatprep.subr.bf16.mxu0 %v4247_v14  ;;  %v4309_v60 = vld [vmem:[%s6007_s6 + $0x10] sm:$0xff]   ;;  %v4310_v61 = vld [vmem:[%s6007_s6 + $0x58] sm:$0xff]   ;;  %v4312_v63 = vld [vmem:[%s6007_s6 + $0x60] sm:$0xff]  }
  0x26   :  { %v4311_v62 = vld [vmem:[%s6007_s6 + $0x18] sm:$0xff]   ;;  %v4313_v0 = vld [vmem:[%s6007_s6 + $0x20] sm:$0xff]  }
  0x27   :  { %485 = vmatpush1.bf16.msra.mxu1 %v4270_v28 }
  0x28   :  { %210 = vmatpush1.bf16.msra.mxu0 %v4249_v17  ;;  %486 = vmatprep.subr.bf16.mxu1 %v4271_v29 }
  0x29   :  { %211 = vmatprep.subr.bf16.mxu0 %v4250_v18 }
  0x2b   :  { %487 = vmatpush1.bf16.msra.mxu1 %v4273_v30 }
  0x2c   :  { %212 = vmatpush1.bf16.msra.mxu0 %v4252_v21  ;;  %488 = vmatprep.subr.bf16.mxu1 %v4274_v32 }
  0x2d   :  { %213 = vmatprep.subr.bf16.mxu0 %v4253_v22 }
  0x2f   :  { %489 = vmatpush1.bf16.msra.mxu1 %v4276_v35 }
  0x30   :  { %214 = vmatpush1.bf16.msra.mxu0 %v4255_v25  ;;  %490 = vmatprep.subr.bf16.mxu1 %v4277_v36 }
  0x31   :  { %3999 = vmatprep.subr.bf16.mxu0 %v4304_v55 }
  0x33   :  { %232 = vmatmul.mubr.bf16.vlgmr.msra.gmra.mrb[0].mxu0 %v4931_v31  ;;  %491 = vmatpush1.bf16.msra.mxu1 %v4279_v37 }
  0x34   :  { %241 = vmatprep.mubr.bf16.mxu0 %v4700_v2  ;;  %492 = vmatprep.subr.bf16.mxu1 %v4280_v39 }
  0x35   :  { %4000 = vmatpush3.bf16.msra.mxu0 %v4305_v56 }
  0x36   :  { %4001 = vmatprep.subr.bf16.mxu0 %v4306_v57 }
  0x37   :  { %493 = vmatpush1.bf16.msra.mxu1 %v4282_v40 }
  0x38   :  { %494 = vmatprep.subr.bf16.mxu1 %v4283_v41 }
  0x39   :  { %4002 = vmatpush3.bf16.msra.mxu0 %v4307_v58 }
  0x3a   :  { %4003 = vmatprep.subr.bf16.mxu0 %v4308_v59 }
  0x3b   :  { %242 = vmatmul.mubr.bf16.gmra.mrb[4].mxu0 %v4953_v38  ;;  %495 = vmatpush1.bf16.msra.mxu1 %v4285_v42 }
  0x3c   :  { %496 = vmatprep.subr.bf16.mxu1 %v4286_v43 }
  0x3d   :  { %4004 = vmatpush3.bf16.msra.mxu0 %v4309_v60 }
  0x3e   :  { %4005 = vmatprep.subr.bf16.mxu0 %v4310_v61 }
  0x3f   :  { %497 = vmatpush1.bf16.msra.mxu1 %v4288_v44 }
  0x40   :  { %498 = vmatprep.subr.bf16.mxu1 %v4289_v45 }
  0x41   :  { %4006 = vmatpush3.bf16.msra.mxu0 %v4311_v62 }
  0x42   :  { %4007 = vmatprep.subr.bf16.mxu0 %v4312_v63 }
  0x43   :  { %499 = vmatpush1.bf16.msra.mxu1 %v4291_v46 }
  0x44   :  { %500 = vmatprep.subr.bf16.mxu1 %v4292_v47 }
  0x45   :  { %4008 = vmatpush3.bf16.msra.mxu0 %v4313_v0 }
  0x47   :  { %501 = vmatpush1.bf16.msra.mxu1 %v4294_v48 }
  0x48   :  { %502 = vmatprep.subr.bf16.mxu1 %v4295_v49 }
  0x4b   :  { %503 = vmatpush1.bf16.msra.mxu1 %v4297_v50 }
  0x4c   :  { %504 = vmatprep.subr.bf16.mxu1 %v4298_v51 }
  0x4f   :  { %505 = vmatpush1.bf16.msra.mxu1 %v4300_v52 }
  0x50   :  { %506 = vmatprep.subr.bf16.mxu1 %v4301_v53 }
  0x53   :  { %507 = vmatpush1.bf16.msra.mxu1 %v4303_v54 }
  0x54   :  { %33 = vsyncpa [#allocation4], 0  ;;  %v109_v1 = vlaneseq  ;;  %s6008_s0 = sld [smem:[#allocation10_spill]]  ;;  %v4314_v47 = vld [vmem:[%s6007_s6 + $0x68] sm:$0xff]   ;;  %v4316_v49 = vld [vmem:[%s6007_s6 + $0x70] sm:$0xff]   ;;  %s6009_s7 = sld [smem:[#allocation15_spill]] }
  0x55   :  { %v4315_v48 = vld [vmem:[%s6007_s6 + $0x28] sm:$0xff]   ;;  %4009 = vmatprep.subr.bf16.mxu0 %v4314_v47  ;;  %v4317_v50 = vld [vmem:[%s6007_s6 + $0x30] sm:$0xff]   ;;  %v4318_v51 = vld [vmem:[%s6007_s6 + $0x78] sm:$0xff]   ;;  %s6010_s29 = sld [smem:[#allocation12_spill]]  ;;  %s6011_s4 = sld [smem:[#allocation17_spill]]  ;;  %vm3610_vm0 = vcmask 7168  }
  0x56   :  { %v5034_v3 = vshrl.u32 %v109_v1, 7  ;;  %4010 = vmatpush3.bf16.msra.mxu0 %v4315_v48  ;;  %v4319_v52 = vld [vmem:[%s6007_s6 + $0x38] sm:$0xff]   ;;  %s6012_s30 = sld [smem:[#allocation14_spill]]  ;;  %s6014_s5 = sld [smem:[#allocation18_spill]] }
  0x57   :  { %4011 = vmatprep.subr.bf16.mxu0 %v4316_v49 }
  0x58   :  { %v5037_v4 = vsub.s32 0, %v5034_v3  ;;  %v5043_v6 = vsub.s32 1, %v5034_v3 }
  0x5a   :  { %v107_v5 = vld [vmem:[%s6008_s0] sm:$0x3]  ;;  %4012 = vmatpush3.bf16.msra.mxu0 %v4317_v50  ;;  %v4322_v53 = vld [vmem:[%s6009_s7 + $0x4] ss:$16 sps:$4 sm:$0xff]   ;;  %v4323_v54 = vld [vmem:[%s6009_s7 + $0x8] ss:$16 sps:$4 sm:$0xff]  }
  0x5b   :  { %v112_v7 = vrot.slane %v107_v5, %v5037_v4  ;;  %v116_v8 = vrot.slane %v107_v5, %v5043_v6  ;;  %4013 = vmatprep.subr.bf16.mxu0 %v4318_v51  ;;  %v4325_v55 = vld [vmem:[%s6009_s7 + $0xc] ss:$16 sps:$4 sm:$0xff]   ;;  %v4329_v57 = vld [vmem:[%s6009_s7 + $0x28] ss:$16 sps:$4 sm:$0xff]   ;;  %v304_v5 = vld [vmem:[%s6010_s29] sm:$0x3] }
  0x5c   :  { %v4331_v56 = vld [vmem:[%s6009_s7 + $0x2c] ss:$16 sps:$4 sm:$0xff]   ;;  %1002 = vmatprep.subr.bf16.mxu1 %v4325_v55  ;;  %v4335_v59 = vld [vmem:[%s6009_s7 + $0x48] ss:$16 sps:$4 sm:$0xff]   ;;  %v4334_v47 = vld [vmem:[%s6009_s7 + $0x44] ss:$16 sps:$4 sm:$0xff]  }
  0x5d   :  { %v4337_v58 = vld [vmem:[%s6009_s7 + $0x4c] ss:$16 sps:$4 sm:$0xff]   ;;  %v4341_v61 = vld [vmem:[%s6009_s7 + $0x68] ss:$16 sps:$4 sm:$0xff]   ;;  %v4332_v51 = vld [vmem:[%s6009_s7 + $0x40] ss:$16 sps:$4 sm:$0xff]  }
  0x5e   :  { %4014 = vmatpush3.bf16.msra.mxu0 %v4319_v52  ;;  %v4343_v60 = vld [vmem:[%s6009_s7 + $0x6c] ss:$16 sps:$4 sm:$0xff]   ;;  %v4347_v63 = vld [vmem:[%s6009_s7 + $0x88] ss:$16 sps:$4 sm:$0xff]   ;;  %v4340_v52 = vld [vmem:[%s6009_s7 + $0x64] ss:$16 sps:$4 sm:$0xff]  }
  0x5f   :  { %949 = vmatprep.subr.bf16.mxu0 %v4322_v53  ;;  %v4349_v62 = vld [vmem:[%s6009_s7 + $0x8c] ss:$16 sps:$4 sm:$0xff]   ;;  %v4353_v1 = vld [vmem:[%s6009_s7 + $0xa8] ss:$16 sps:$4 sm:$0xff]   ;;  %v4338_v53 = vld [vmem:[%s6009_s7 + $0x60] ss:$16 sps:$4 sm:$0xff]  }
  0x60   :  { %v4355_v0 = vld [vmem:[%s6009_s7 + $0xac] ss:$16 sps:$4 sm:$0xff]   ;;  %v4344_v55 = vld [vmem:[%s6009_s7 + $0x80] ss:$16 sps:$4 sm:$0xff]  }
 0x106   :  { %v233_v9 = vpop.f32.mrb[0].mxu0 }
 0x107   :  { %v234_v10 = vadd.f32 %v233_v9, %v112_v7  ;;  %v235_v11 = vpop.f32.mrb[1].mxu0 }
 0x108   :  { %v236_v12 = vadd.f32 %v235_v11, %v116_v8  ;;  %v237_v13 = vpop.f32.mrb[2].mxu0 }
 0x109   :  { %v252_v14 = vmul.f32 0.01, %v234_v10  ;;  %v238_v15 = vadd.f32 %v237_v13, %v112_v7  ;;  %v239_v16 = vpop.f32.mrb[3].mxu0 }
 0x10a   :  { %v253_v17 = vmul.f32 0.01, %v236_v12  ;;  %v240_v18 = vadd.f32 %v239_v16, %v116_v8 }
 0x10b   :  { %v254_v19 = vmul.f32 0.01, %v238_v15  ;;  %v260_v21 = vmax.f32 %v234_v10, %v252_v14 }
 0x10c   :  { %v255_v20 = vmul.f32 0.01, %v240_v18  ;;  %v261_v24 = vmax.f32 %v236_v12, %v253_v17 }
 0x10d   :  { %v262_v22 = vmax.f32 %v238_v15, %v254_v19 }
 0x10e   :  { %v243_v23 = vpop.f32.mrb[4].mxu0  ;;  %v263_v25 = vmax.f32 %v240_v18, %v255_v20 }
 0x10f   :  { %v244_v26 = vadd.f32 %v243_v23, %v112_v7  ;;  %v245_v27 = vpop.f32.mrb[5].mxu0  ;;  %v268_v28 = vpack.c.bf16 %v262_v22, %v260_v21 }
 0x110   :  { %v246_v29 = vadd.f32 %v245_v27, %v116_v8  ;;  %v247_v30 = vpop.f32.mrb[6].mxu0  ;;  %v269_v32 = vpack.c.bf16 %v263_v25, %v261_v24 }
 0x111   :  { %v256_v33 = vmul.f32 0.01, %v244_v26  ;;  %v248_v34 = vadd.f32 %v247_v30, %v112_v7  ;;  %v249_v35 = vpop.f32.mrb[7].mxu0  ;;  %v309_v7 = vrot.slane %v304_v5, %v5037_v4 }
 0x112   :  { %v257_v36 = vmul.f32 0.01, %v246_v29  ;;  %v250_v37 = vadd.f32 %v249_v35, %v116_v8  ;;  %508 = vmatprep.mubr.bf16.mxu1 %v269_v32  ;;  %v313_v8 = vrot.slane %v304_v5, %v5043_v6  ;;  %v4368_v5 = vld [vmem:[%s6011_s4 + $0x40] sm:$0xff]  }
 0x113   :  { %v264_v39 = vmax.f32 %v244_v26, %v256_v33  ;;  %v258_v40 = vmul.f32 0.01, %v248_v34  ;;  %509 = vmatmul.mubr.bf16.vlgmr.msra.gmra.mrb[0].mxu1 %v268_v28  ;;  %v4320_v33 = vld [vmem:[%s6009_s7] ss:$16 sps:$4 sm:$0xff]  }
 0x114   :  { %v265_v41 = vmax.f32 %v246_v29, %v257_v36  ;;  %v259_v42 = vmul.f32 0.01, %v250_v37  ;;  %1003 = vmatpush1.bf16.msra.mxu1 %v4323_v54  ;;  %v4346_v54 = vld [vmem:[%s6009_s7 + $0x84] ss:$16 sps:$4 sm:$0xff]  }
 0x115   :  { %v266_v43 = vmax.f32 %v248_v34, %v258_v40  ;;  %1004 = vmatprep.subr.bf16.mxu1 %v4331_v56  ;;  %v4352_v56 = vld [vmem:[%s6009_s7 + $0xa4] ss:$16 sps:$4 sm:$0xff]  }
 0x116   :  { %v267_v44 = vmax.f32 %v250_v37, %v259_v42  ;;  %v4328_v37 = vld [vmem:[%s6009_s7 + $0x24] ss:$16 sps:$4 sm:$0xff]  }
 0x117   :  { %v270_v45 = vpack.c.bf16 %v266_v43, %v264_v39 }
 0x118   :  { %v271_v46 = vpack.c.bf16 %v267_v44, %v265_v41  ;;  %1005 = vmatpush1.bf16.msra.mxu1 %v4329_v57  ;;  %v4350_v57 = vld [vmem:[%s6009_s7 + $0xa0] ss:$16 sps:$4 sm:$0xff]  }
 0x119   :  { %1006 = vmatprep.subr.bf16.mxu1 %v4337_v58  ;;  %v4358_v58 = vld [vmem:[%s6009_s7 + $0xc4] ss:$16 sps:$4 sm:$0xff]  }
 0x11a   :  { %518 = vmatprep.mubr.bf16.mxu1 %v271_v46 }
 0x11b   :  { %519 = vmatmul.mubr.bf16.gmra.mrb[4].mxu1 %v270_v45  ;;  %v4326_v45 = vld [vmem:[%s6009_s7 + $0x20] ss:$16 sps:$4 sm:$0xff]  }
 0x11c   :  { %1034 = vmatprep.mubr.bf16.mxu1 %v4700_v2  ;;  %1007 = vmatpush1.bf16.msra.mxu1 %v4335_v59  ;;  %v4361_v59 = vld [vmem:[%s6009_s7 + $0xcc] ss:$16 sps:$4 sm:$0xff]  }
 0x11d   :  { %1008 = vmatprep.subr.bf16.mxu1 %v4343_v60  ;;  %v4356_v60 = vld [vmem:[%s6009_s7 + $0xc0] ss:$16 sps:$4 sm:$0xff]  }
 0x120   :  { %1009 = vmatpush1.bf16.msra.mxu1 %v4341_v61  ;;  %v4359_v61 = vld [vmem:[%s6009_s7 + $0xc8] ss:$16 sps:$4 sm:$0xff]  }
 0x121   :  { %1010 = vmatprep.subr.bf16.mxu1 %v4349_v62  ;;  %v4364_v62 = vld [vmem:[%s6009_s7 + $0xe4] ss:$16 sps:$4 sm:$0xff]  }
 0x124   :  { %1011 = vmatpush1.bf16.msra.mxu1 %v4347_v63  ;;  %v4367_v63 = vld [vmem:[%s6009_s7 + $0xec] ss:$16 sps:$4 sm:$0xff]  }
 0x125   :  { %1012 = vmatprep.subr.bf16.mxu1 %v4355_v0  ;;  %v4362_v0 = vld [vmem:[%s6009_s7 + $0xe0] ss:$16 sps:$4 sm:$0xff]  }
 0x128   :  { %1013 = vmatpush1.bf16.msra.mxu1 %v4353_v1  ;;  %v4365_v1 = vld [vmem:[%s6009_s7 + $0xe8] ss:$16 sps:$4 sm:$0xff]  }
 0x129   :  { %1014 = vmatprep.subr.bf16.mxu1 %v4361_v59  ;;  %v4402_v59 = vld [vmem:[%s5971_s11 + $0x4] ss:$16 sps:$4 sm:$0xff]  }
 0x12c   :  { %1015 = vmatpush1.bf16.msra.mxu1 %v4359_v61  ;;  %v5276_v61 = vsub.s32 2, %v5034_v3 }
 0x12d   :  { %1016 = vmatprep.subr.bf16.mxu1 %v4367_v63  ;;  %v5282_v63 = vsub.s32 3, %v5034_v3 }
 0x130   :  { %1017 = vmatpush1.bf16.msra.mxu1 %v4365_v1 }
 0x1e6   :  { %v510_v9 = vpop.f32.mrb[0].mxu1 }
 0x1e7   :  { %v511_v10 = vadd.f32 %v510_v9, %v309_v7  ;;  %v512_v11 = vpop.f32.mrb[1].mxu1  ;;  %v3722_v9 = vld [vmem:[%s6012_s30] ss:$0 sm:$0xff] }
 0x1e8   :  { %v513_v12 = vadd.f32 %v512_v11, %v313_v8  ;;  %v514_v13 = vpop.f32.mrb[2].mxu1 }
 0x1e9   :  { %v529_v14 = vmul.f32 0.01, %v511_v10  ;;  %v515_v15 = vadd.f32 %v514_v13, %v309_v7  ;;  %v516_v16 = vpop.f32.mrb[3].mxu1 }
 0x1ea   :  { %v530_v17 = vmul.f32 0.01, %v513_v12  ;;  %v517_v18 = vadd.f32 %v516_v16, %v313_v8 }
 0x1eb   :  { %v531_v19 = vmul.f32 0.01, %v515_v15  ;;  %v537_v21 = vmax.f32 %v511_v10, %v529_v14 }
 0x1ec   :  { %v532_v20 = vmul.f32 0.01, %v517_v18  ;;  %v538_v23 = vmax.f32 %v513_v12, %v530_v17 }
 0x1ed   :  { %v539_v22 = vmax.f32 %v515_v15, %v531_v19  ;;  %v4370_v19 = vld [vmem:[%s6011_s4] sm:$0xff]  }
 0x1ee   :  { %v540_v24 = vmax.f32 %v517_v18, %v532_v20  ;;  %v520_v25 = vpop.f32.mrb[4].mxu1  ;;  %v4371_v20 = vld [vmem:[%s6011_s4 + $0x80] sm:$0xff]  }
 0x1ef   :  { %v545_v26 = vpack.c.bf16 %v539_v22, %v537_v21  ;;  %v521_v27 = vadd.f32 %v520_v25, %v309_v7  ;;  %v522_v28 = vpop.f32.mrb[5].mxu1  ;;  %v4372_v22 = vld [vmem:[%s6011_s4 + $0x48] sm:$0xff]  }
 0x1f0   :  { %v523_v29 = vadd.f32 %v522_v28, %v313_v8  ;;  %v524_v30 = vpop.f32.mrb[6].mxu1  ;;  %v546_v32 = vpack.c.bf16 %v540_v24, %v538_v23  ;;  %v4373_v23 = vld [vmem:[%s6011_s4 + $0xc8] sm:$0xff]  }
 0x1f1   :  { %v533_v34 = vmul.f32 0.01, %v521_v27  ;;  %v525_v35 = vadd.f32 %v524_v30, %v309_v7  ;;  %v526_v36 = vpop.f32.mrb[7].mxu1  ;;  %v4369_v7 = vld [vmem:[%s6011_s4 + $0xc0] sm:$0xff]   ;;  %v4375_v30 = vld [vmem:[%s6011_s4 + $0x88] sm:$0xff]  }
 0x1f2   :  { %v534_v39 = vmul.f32 0.01, %v523_v29  ;;  %v527_v40 = vadd.f32 %v526_v36, %v313_v8  ;;  %716 = vmatprep.mubr.bf16.mxu0 %v546_v32  ;;  %4055 = vmatprep.subr.bf16.mxu1 %v4369_v7  ;;  %v4376_v32 = vld [vmem:[%s6011_s4 + $0x50] sm:$0xff]  }
 0x1f3   :  { %v541_v41 = vmax.f32 %v521_v27, %v533_v34  ;;  %v535_v42 = vmul.f32 0.01, %v525_v35  ;;  %717 = vmatmul.mubr.bf16.vlgmr.msra.gmra.mrb[8].mxu0 %v545_v26  ;;  %v4378_v36 = vld [vmem:[%s6011_s4 + $0x10] sm:$0xff]  }
 0x1f4   :  { %v542_v43 = vmax.f32 %v523_v29, %v534_v39  ;;  %v536_v44 = vmul.f32 0.01, %v527_v40  ;;  %950 = vmatpush1.bf16.msra.mxu0 %v4320_v33  ;;  %v4374_v29 = vld [vmem:[%s6011_s4 + $0x8] sm:$0xff]   ;;  %v4377_v33 = vld [vmem:[%s6011_s4 + $0xd0] sm:$0xff]   ;;  %v4380_v39 = vld [vmem:[%s6011_s4 + $0x58] sm:$0xff]  }
 0x1f5   :  { %v543_v46 = vmax.f32 %v525_v35, %v535_v42  ;;  %951 = vmatprep.subr.bf16.mxu0 %v4328_v37  ;;  %v4379_v37 = vld [vmem:[%s6011_s4 + $0x90] sm:$0xff]   ;;  %v4383_v42 = vld [vmem:[%s6011_s4 + $0x98] sm:$0xff]  }
 0x1f6   :  { %v544_v48 = vmax.f32 %v527_v40, %v536_v44  ;;  %v4381_v40 = vld [vmem:[%s6011_s4 + $0xd8] sm:$0xff]   ;;  %v4385_v44 = vld [vmem:[%s6011_s4 + $0xe0] sm:$0xff]  }
 0x1f7   :  { %v547_v49 = vpack.c.bf16 %v543_v46, %v541_v41  ;;  %v4382_v41 = vld [vmem:[%s6011_s4 + $0x18] sm:$0xff]   ;;  %v4387_v46 = vld [vmem:[%s6011_s4 + $0xa0] sm:$0xff]  }
 0x1f8   :  { %v548_v50 = vpack.c.bf16 %v544_v48, %v542_v43  ;;  %952 = vmatpush1.bf16.msra.mxu0 %v4326_v45  ;;  %v4384_v43 = vld [vmem:[%s6011_s4 + $0x60] sm:$0xff]   ;;  %v4389_v48 = vld [vmem:[%s6011_s4 + $0xe8] sm:$0xff]  }
 0x1f9   :  { %953 = vmatprep.subr.bf16.mxu0 %v4334_v47  ;;  %v4386_v45 = vld [vmem:[%s6011_s4 + $0x20] sm:$0xff]   ;;  %v4388_v47 = vld [vmem:[%s6011_s4 + $0x68] sm:$0xff]  }
 0x1fa   :  { %724 = vmatprep.mubr.bf16.mxu0 %v548_v50  ;;  %v4391_v50 = vld [vmem:[%s6011_s4 + $0xa8] sm:$0xff]  }
 0x1fb   :  { %725 = vmatmul.mubr.bf16.gmra.mrb[12].mxu0 %v547_v49  ;;  %v4390_v49 = vld [vmem:[%s6011_s4 + $0x28] sm:$0xff]  }
 0x1fc   :  { %954 = vmatpush1.bf16.msra.mxu0 %v4332_v51  ;;  %981 = vmatprep.mubr.bf16.mxu0 %v4700_v2  ;;  %v4392_v51 = vld [vmem:[%s6011_s4 + $0x70] sm:$0xff]  }
 0x1fd   :  { %955 = vmatprep.subr.bf16.mxu0 %v4340_v52  ;;  %v4393_v52 = vld [vmem:[%s6011_s4 + $0xf0] sm:$0xff]  }
 0x200   :  { %956 = vmatpush1.bf16.msra.mxu0 %v4338_v53  ;;  %v4394_v53 = vld [vmem:[%s6011_s4 + $0x30] sm:$0xff]  }
 0x201   :  { %957 = vmatprep.subr.bf16.mxu0 %v4346_v54  ;;  %v4395_v54 = vld [vmem:[%s6011_s4 + $0xb0] sm:$0xff]  }
 0x204   :  { %958 = vmatpush1.bf16.msra.mxu0 %v4344_v55  ;;  %v4396_v55 = vld [vmem:[%s6011_s4 + $0x78] sm:$0xff]  }
 0x205   :  { %959 = vmatprep.subr.bf16.mxu0 %v4352_v56  ;;  %v4397_v56 = vld [vmem:[%s6011_s4 + $0xf8] sm:$0xff]  }
 0x208   :  { %960 = vmatpush1.bf16.msra.mxu0 %v4350_v57  ;;  %v4398_v57 = vld [vmem:[%s6011_s4 + $0x38] sm:$0xff]  }
 0x209   :  { %961 = vmatprep.subr.bf16.mxu0 %v4358_v58  ;;  %v4399_v58 = vld [vmem:[%s6011_s4 + $0xb8] sm:$0xff]   ;;  %s6013_s4 = sld [smem:[#allocation16_spill]] }
 0x20c   :  { %962 = vmatpush1.bf16.msra.mxu0 %v4356_v60  ;;  %v4405_v60 = vld [vmem:[%s5971_s11 + $0xc] ss:$16 sps:$4 sm:$0xff]  }
 0x20d   :  { %963 = vmatprep.subr.bf16.mxu0 %v4364_v62 }
 0x20f   :  { %v767_v62 = vld [vmem:[%s6013_s4] sm:$0xf] }
 0x210   :  { %964 = vmatpush1.bf16.msra.mxu0 %v4362_v0  ;;  %v772_v0 = vrot.slane %v767_v62, %v5037_v4  ;;  %v780_v1 = vrot.slane %v767_v62, %v5276_v61  ;;  %v784_v7 = vrot.slane %v767_v62, %v5282_v63 }
 0x211   :  { %4027 = vmatprep.subr.bf16.mxu0 %v4368_v5  ;;  %v776_v5 = vrot.slane %v767_v62, %v5043_v6 }
 0x2c6   :  { %v4015_v8 = vpop.f32.mrb[8].mxu0 }
 0x2c7   :  { %v4016_v10 = vpop.f32.mrb[9].mxu0 }
 0x2c8   :  { %v4017_v11 = vadd.f32 %v4016_v10, %v4015_v8  ;;  %v4018_v12 = vpop.f32.mrb[10].mxu0 }
 0x2c9   :  { %v4019_v13 = vpop.f32.mrb[11].mxu0 }
 0x2ca   :  { %v719_v14 = vadd.f32 %v4017_v11, %v3722_v9  ;;  %v4020_v15 = vadd.f32 %v4019_v13, %v4018_v12 }
 0x2cc   :  { %2179 = vst [vmem:[#allocation2] sm:$0xff] %v719_v14  ;;  %v722_v16 = vadd.f32 %v4020_v15, %v3722_v9 }
 0x2ce   :  { %v733_v17 = vpack.c.bf16 %v722_v16, %v719_v14  ;;  %2180 = vst [vmem:[#allocation2 + $0x8] sm:$0xff] %v722_v16  ;;  %v4021_v18 = vpop.f32.mrb[12].mxu0 }
 0x2cf   :  { %v4022_v21 = vpop.f32.mrb[13].mxu0 }
 0x2d0   :  { %v4023_v24 = vadd.f32 %v4022_v21, %v4021_v18  ;;  %v4024_v25 = vpop.f32.mrb[14].mxu0  ;;  %982 = vmatmul.mubr.bf16.vlgmr.msra.gmra.mrb[16].mxu0 %v733_v17  ;;  %1035 = vmatmul.mubr.bf16.vlgmr.msra.gmra.mrb[8].mxu1 %v733_v17 }
 0x2d1   :  { %v4025_v26 = vpop.f32.mrb[15].mxu0  ;;  %991 = vmatprep.mubr.bf16.mxu0 %v4700_v2  ;;  %1044 = vmatprep.mubr.bf16.mxu1 %v4700_v2 }
 0x2d2   :  { %v727_v27 = vadd.f32 %v4023_v24, %v3722_v9  ;;  %v4026_v28 = vadd.f32 %v4025_v26, %v4024_v25  ;;  %4028 = vmatpush3.bf16.msra.mxu0 %v4370_v19  ;;  %4056 = vmatpush3.bf16.msra.mxu1 %v4371_v20 }
 0x2d3   :  { %4029 = vmatprep.subr.bf16.mxu0 %v4372_v22  ;;  %4057 = vmatprep.subr.bf16.mxu1 %v4373_v23 }
 0x2d4   :  { %v730_v34 = vadd.f32 %v4026_v28, %v3722_v9 }
 0x2d6   :  { %v734_v35 = vpack.c.bf16 %v730_v34, %v727_v27  ;;  %4030 = vmatpush3.bf16.msra.mxu0 %v4374_v29  ;;  %4058 = vmatpush3.bf16.msra.mxu1 %v4375_v30 }
 0x2d7   :  { %4031 = vmatprep.subr.bf16.mxu0 %v4376_v32  ;;  %4059 = vmatprep.subr.bf16.mxu1 %v4377_v33 }
 0x2d8   :  { %992 = vmatmul.mubr.bf16.gmra.mrb[20].mxu0 %v734_v35  ;;  %1045 = vmatmul.mubr.bf16.gmra.mrb[12].mxu1 %v734_v35 }
 0x2da   :  { %4032 = vmatpush3.bf16.msra.mxu0 %v4378_v36  ;;  %4060 = vmatpush3.bf16.msra.mxu1 %v4379_v37 }
 0x2db   :  { %4033 = vmatprep.subr.bf16.mxu0 %v4380_v39  ;;  %4061 = vmatprep.subr.bf16.mxu1 %v4381_v40 }
 0x2de   :  { %4034 = vmatpush3.bf16.msra.mxu0 %v4382_v41  ;;  %4062 = vmatpush3.bf16.msra.mxu1 %v4383_v42 }
 0x2df   :  { %4035 = vmatprep.subr.bf16.mxu0 %v4384_v43  ;;  %4063 = vmatprep.subr.bf16.mxu1 %v4385_v44 }
 0x2e2   :  { %4036 = vmatpush3.bf16.msra.mxu0 %v4386_v45  ;;  %4064 = vmatpush3.bf16.msra.mxu1 %v4387_v46 }
 0x2e3   :  { %4037 = vmatprep.subr.bf16.mxu0 %v4388_v47  ;;  %4065 = vmatprep.subr.bf16.mxu1 %v4389_v48 }
 0x2e6   :  { %4038 = vmatpush3.bf16.msra.mxu0 %v4390_v49  ;;  %4066 = vmatpush3.bf16.msra.mxu1 %v4391_v50  ;;  %v4400_v49 = vld [vmem:[%s5971_s11] ss:$16 sps:$4 sm:$0xff]   ;;  %v4403_v50 = vld [vmem:[%s5971_s11 + $0x8] ss:$16 sps:$4 sm:$0xff]  }
 0x2e7   :  { %4039 = vmatprep.subr.bf16.mxu0 %v4392_v51  ;;  %4067 = vmatprep.subr.bf16.mxu1 %v4393_v52 }
 0x2ea   :  { %4040 = vmatpush3.bf16.msra.mxu0 %v4394_v53  ;;  %4068 = vmatpush3.bf16.msra.mxu1 %v4395_v54 }
 0x2eb   :  { %4041 = vmatprep.subr.bf16.mxu0 %v4396_v55  ;;  %4069 = vmatprep.subr.bf16.mxu1 %v4397_v56 }
 0x2ee   :  { %4042 = vmatpush3.bf16.msra.mxu0 %v4398_v57  ;;  %4070 = vmatpush3.bf16.msra.mxu1 %v4399_v58  ;;  %v4408_v57 = vld [vmem:[%s5971_s11 + $0x24] ss:$16 sps:$4 sm:$0xff]   ;;  %v4411_v58 = vld [vmem:[%s5971_s11 + $0x2c] ss:$16 sps:$4 sm:$0xff]  }
 0x2ef   :  { %1672 = vmatprep.subr.bf16.mxu0 %v4402_v59  ;;  %1725 = vmatprep.subr.bf16.mxu1 %v4405_v60 }
 0x3a3   :  { %v983_v8 = vpop.f32.mrb[16].mxu0  ;;  %v1036_v9 = vpop.f32.mrb[8].mxu1 }
 0x3a4   :  { %v984_v10 = vadd.f32 %v983_v8, %v772_v0  ;;  %v1037_v11 = vadd.f32 %v1036_v9, %v780_v1  ;;  %v985_v12 = vpop.f32.mrb[17].mxu0  ;;  %v1038_v13 = vpop.f32.mrb[9].mxu1 }
 0x3a5   :  { %v986_v14 = vadd.f32 %v985_v12, %v776_v5  ;;  %v1039_v15 = vadd.f32 %v1038_v13, %v784_v7  ;;  %v987_v16 = vpop.f32.mrb[18].mxu0  ;;  %v1040_v17 = vpop.f32.mrb[10].mxu1 }
 0x3a6   :  { %v1055_v3 = vmul.f32 0.01, %v984_v10  ;;  %v1057_v18 = vmul.f32 0.01, %v1037_v11  ;;  %v988_v19 = vadd.f32 %v987_v16, %v772_v0  ;;  %v1041_v20 = vadd.f32 %v1040_v17, %v780_v1  ;;  %v989_v21 = vpop.f32.mrb[19].mxu0  ;;  %v1042_v22 = vpop.f32.mrb[11].mxu1 }
 0x3a7   :  { %v1056_v23 = vmul.f32 0.01, %v986_v14  ;;  %v1058_v24 = vmul.f32 0.01, %v1039_v15  ;;  %v990_v25 = vadd.f32 %v989_v21, %v776_v5  ;;  %v1043_v26 = vadd.f32 %v1042_v22, %v784_v7  ;;  %v4406_v17 = vld [vmem:[%s5971_s11 + $0x20] ss:$16 sps:$4 sm:$0xff]  }
 0x3a8   :  { %v1059_v27 = vmul.f32 0.01, %v988_v19  ;;  %v1061_v28 = vmul.f32 0.01, %v1041_v20  ;;  %v1071_v32 = vmax.f32 %v984_v10, %v1055_v3  ;;  %v1073_v33 = vmax.f32 %v1037_v11, %v1057_v18  ;;  %v4417_v21 = vld [vmem:[%s5971_s11 + $0x4c] ss:$16 sps:$4 sm:$0xff]  }
 0x3a9   :  { %v1060_v29 = vmul.f32 0.01, %v990_v25  ;;  %v1062_v30 = vmul.f32 0.01, %v1043_v26  ;;  %v1072_v36 = vmax.f32 %v986_v14, %v1056_v23  ;;  %v1074_v37 = vmax.f32 %v1039_v15, %v1058_v24 }
 0x3aa   :  { %v1075_v34 = vmax.f32 %v988_v19, %v1059_v27  ;;  %v1077_v35 = vmax.f32 %v1041_v20, %v1061_v28  ;;  %v4414_v20 = vld [vmem:[%s5971_s11 + $0x44] ss:$16 sps:$4 sm:$0xff]  }
 0x3ab   :  { %v1076_v39 = vmax.f32 %v990_v25, %v1060_v29  ;;  %v1078_v40 = vmax.f32 %v1043_v26, %v1062_v30  ;;  %v993_v41 = vpop.f32.mrb[20].mxu0  ;;  %v1046_v42 = vpop.f32.mrb[12].mxu1  ;;  %v4412_v30 = vld [vmem:[%s5971_s11 + $0x40] ss:$16 sps:$4 sm:$0xff]  }
 0x3ac   :  { %v1087_v43 = vpack.c.bf16 %v1075_v34, %v1071_v32  ;;  %v1089_v44 = vpack.c.bf16 %v1077_v35, %v1073_v33  ;;  %v994_v45 = vadd.f32 %v993_v41, %v772_v0  ;;  %v1047_v46 = vadd.f32 %v1046_v42, %v780_v1  ;;  %v995_v47 = vpop.f32.mrb[21].mxu0  ;;  %v1048_v48 = vpop.f32.mrb[13].mxu1  ;;  %v4415_v32 = vld [vmem:[%s5971_s11 + $0x48] ss:$16 sps:$4 sm:$0xff]   ;;  %v4420_v33 = vld [vmem:[%s5971_s11 + $0x64] ss:$16 sps:$4 sm:$0xff]  }
 0x3ad   :  { %v996_v51 = vadd.f32 %v995_v47, %v776_v5  ;;  %v1049_v52 = vadd.f32 %v1048_v48, %v784_v7  ;;  %v997_v53 = vpop.f32.mrb[22].mxu0  ;;  %v1050_v54 = vpop.f32.mrb[14].mxu1  ;;  %v1088_v55 = vpack.c.bf16 %v1076_v39, %v1072_v36  ;;  %v1090_v56 = vpack.c.bf16 %v1078_v40, %v1074_v37  ;;  %v4423_v34 = vld [vmem:[%s5971_s11 + $0x6c] ss:$16 sps:$4 sm:$0xff]   ;;  %v4418_v35 = vld [vmem:[%s5971_s11 + $0x60] ss:$16 sps:$4 sm:$0xff]  }
 0x3ae   :  { %v1063_v59 = vmul.f32 0.01, %v994_v45  ;;  %v1065_v60 = vmul.f32 0.01, %v1047_v46  ;;  %v998_v62 = vadd.f32 %v997_v53, %v772_v0  ;;  %v1051_v8 = vadd.f32 %v1050_v54, %v780_v1  ;;  %v999_v9 = vpop.f32.mrb[23].mxu0  ;;  %v1052_v10 = vpop.f32.mrb[15].mxu1 }
 0x3af   :  { %v1064_v11 = vmul.f32 0.01, %v996_v51  ;;  %v1066_v12 = vmul.f32 0.01, %v1049_v52  ;;  %v1000_v13 = vadd.f32 %v999_v9, %v776_v5  ;;  %v1053_v14 = vadd.f32 %v1052_v10, %v784_v7  ;;  %1390 = vmatprep.mubr.bf16.mxu0 %v1088_v55  ;;  %1439 = vmatprep.mubr.bf16.mxu1 %v1090_v56  ;;  %v4409_v1 = vld [vmem:[%s5971_s11 + $0x28] ss:$16 sps:$4 sm:$0xff]  }
 0x3b0   :  { %v1067_v15 = vmul.f32 0.01, %v998_v62  ;;  %v1069_v16 = vmul.f32 0.01, %v1051_v8  ;;  %1391 = vmatmul.mubr.bf16.vlgmr.msra.gmra.mrb[24].mxu0 %v1087_v43  ;;  %1440 = vmatmul.mubr.bf16.vlgmr.msra.gmra.mrb[16].mxu1 %v1089_v44  ;;  %v1079_v3 = vmax.f32 %v994_v45, %v1063_v59  ;;  %v1081_v5 = vmax.f32 %v1047_v46, %v1065_v60  ;;  %v4421_v36 = vld [vmem:[%s5971_s11 + $0x68] ss:$16 sps:$4 sm:$0xff]  }
 0x3b1   :  { %v1068_v18 = vmul.f32 0.01, %v1000_v13  ;;  %v1070_v0 = vmul.f32 0.01, %v1053_v14  ;;  %1673 = vmatpush1.bf16.msra.mxu0 %v4400_v49  ;;  %1726 = vmatpush1.bf16.msra.mxu1 %v4403_v50  ;;  %v1080_v22 = vmax.f32 %v996_v51, %v1064_v11  ;;  %v1082_v23 = vmax.f32 %v1049_v52, %v1066_v12  ;;  %v4426_v37 = vld [vmem:[%s5971_s11 + $0x84] ss:$16 sps:$4 sm:$0xff]  }
 0x3b2   :  { %v1083_v7 = vmax.f32 %v998_v62, %v1067_v15  ;;  %v1085_v19 = vmax.f32 %v1051_v8, %v1069_v16  ;;  %1674 = vmatprep.subr.bf16.mxu0 %v4408_v57  ;;  %1727 = vmatprep.subr.bf16.mxu1 %v4411_v58  ;;  %v4429_v39 = vld [vmem:[%s5971_s11 + $0x8c] ss:$16 sps:$4 sm:$0xff]   ;;  %v4424_v40 = vld [vmem:[%s5971_s11 + $0x80] ss:$16 sps:$4 sm:$0xff]   ;;  %v4427_v41 = vld [vmem:[%s5971_s11 + $0x88] ss:$16 sps:$4 sm:$0xff]  }
 0x3b3   :  { %v1084_v24 = vmax.f32 %v1000_v13, %v1068_v18  ;;  %v1086_v25 = vmax.f32 %v1053_v14, %v1070_v0  ;;  %v4432_v42 = vld [vmem:[%s5971_s11 + $0xa4] ss:$16 sps:$4 sm:$0xff]   ;;  %v4435_v43 = vld [vmem:[%s5971_s11 + $0xac] ss:$16 sps:$4 sm:$0xff]   ;;  %v4430_v44 = vld [vmem:[%s5971_s11 + $0xa0] ss:$16 sps:$4 sm:$0xff]  }
 0x3b4   :  { %v1091_v26 = vpack.c.bf16 %v1083_v7, %v1079_v3  ;;  %v1093_v27 = vpack.c.bf16 %v1085_v19, %v1081_v5  ;;  %v4433_v45 = vld [vmem:[%s5971_s11 + $0xa8] ss:$16 sps:$4 sm:$0xff]   ;;  %v4438_v46 = vld [vmem:[%s5971_s11 + $0xc4] ss:$16 sps:$4 sm:$0xff]   ;;  %v4441_v47 = vld [vmem:[%s5971_s11 + $0xcc] ss:$16 sps:$4 sm:$0xff]  }
 0x3b5   :  { %v1092_v28 = vpack.c.bf16 %v1084_v24, %v1080_v22  ;;  %v1094_v29 = vpack.c.bf16 %v1086_v25, %v1082_v23  ;;  %1675 = vmatpush1.bf16.msra.mxu0 %v4406_v17  ;;  %1728 = vmatpush1.bf16.msra.mxu1 %v4409_v1  ;;  %v4436_v48 = vld [vmem:[%s5971_s11 + $0xc0] ss:$16 sps:$4 sm:$0xff]   ;;  %v4439_v49 = vld [vmem:[%s5971_s11 + $0xc8] ss:$16 sps:$4 sm:$0xff]   ;;  %v4444_v50 = vld [vmem:[%s5971_s11 + $0xe4] ss:$16 sps:$4 sm:$0xff]  }
 0x3b6   :  { %1676 = vmatprep.subr.bf16.mxu0 %v4414_v20  ;;  %1729 = vmatprep.subr.bf16.mxu1 %v4417_v21  ;;  %v4447_v51 = vld [vmem:[%s5971_s11 + $0xec] ss:$16 sps:$4 sm:$0xff]   ;;  %v4442_v52 = vld [vmem:[%s5971_s11 + $0xe0] ss:$16 sps:$4 sm:$0xff]   ;;  %v4445_v53 = vld [vmem:[%s5971_s11 + $0xe8] ss:$16 sps:$4 sm:$0xff]  }
 0x3b7   :  { %1398 = vmatprep.mubr.bf16.mxu0 %v1092_v28  ;;  %1447 = vmatprep.mubr.bf16.mxu1 %v1094_v29  ;;  %v4448_v54 = vld [vmem:[%s5973_s13 + $0x40] sm:$0xff]   ;;  %v4454_v28 = vld [vmem:[%s5973_s13 + $0xc8] sm:$0xff]  }
 0x3b8   :  { %1399 = vmatmul.mubr.bf16.gmra.mrb[28].mxu0 %v1091_v26  ;;  %1448 = vmatmul.mubr.bf16.gmra.mrb[20].mxu1 %v1093_v27  ;;  %v4450_v55 = vld [vmem:[%s5973_s13 + $0xc0] sm:$0xff]   ;;  %v4452_v27 = vld [vmem:[%s5973_s13 + $0x48] sm:$0xff]  }
 0x3b9   :  { %1677 = vmatpush1.bf16.msra.mxu0 %v4412_v30  ;;  %1730 = vmatpush1.bf16.msra.mxu1 %v4415_v32  ;;  %v3771_v58 = vld [vmem:[%s6014_s5] ss:$0 sm:$0xff] }
 0x3ba   :  { %1678 = vmatprep.subr.bf16.mxu0 %v4420_v33  ;;  %1731 = vmatprep.subr.bf16.mxu1 %v4423_v34  ;;  %v4449_v23 = vld [vmem:[%s5973_s13] sm:$0xff]  }
 0x3bb   :  { %1704 = vmatprep.mubr.bf16.mxu0 %v4700_v2  ;;  %1757 = vmatprep.mubr.bf16.mxu1 %v4700_v2  ;;  %v4451_v24 = vld [vmem:[%s5973_s13 + $0x80] sm:$0xff]  }
 0x3bd   :  { %1679 = vmatpush1.bf16.msra.mxu0 %v4418_v35  ;;  %1732 = vmatpush1.bf16.msra.mxu1 %v4421_v36  ;;  %v4453_v35 = vld [vmem:[%s5973_s13 + $0x8] sm:$0xff]  }
 0x3be   :  { %1680 = vmatprep.subr.bf16.mxu0 %v4426_v37  ;;  %1733 = vmatprep.subr.bf16.mxu1 %v4429_v39  ;;  %v4455_v36 = vld [vmem:[%s5973_s13 + $0x88] sm:$0xff]   ;;  %v4456_v37 = vld [vmem:[%s5973_s13 + $0x50] sm:$0xff]  }
 0x3bf   :  { %v4458_v39 = vld [vmem:[%s5973_s13 + $0xd0] sm:$0xff]  }
 0x3c1   :  { %1681 = vmatpush1.bf16.msra.mxu0 %v4424_v40  ;;  %1734 = vmatpush1.bf16.msra.mxu1 %v4427_v41 }
 0x3c2   :  { %1682 = vmatprep.subr.bf16.mxu0 %v4432_v42  ;;  %1735 = vmatprep.subr.bf16.mxu1 %v4435_v43  ;;  %v4457_v42 = vld [vmem:[%s5973_s13 + $0x10] sm:$0xff]  }
 0x3c3   :  { %v4459_v43 = vld [vmem:[%s5973_s13 + $0x90] sm:$0xff]  }
 0x3c5   :  { %1683 = vmatpush1.bf16.msra.mxu0 %v4430_v44  ;;  %1736 = vmatpush1.bf16.msra.mxu1 %v4433_v45  ;;  %v4460_v44 = vld [vmem:[%s5973_s13 + $0x58] sm:$0xff]  }
 0x3c6   :  { %1684 = vmatprep.subr.bf16.mxu0 %v4438_v46  ;;  %1737 = vmatprep.subr.bf16.mxu1 %v4441_v47  ;;  %v4462_v45 = vld [vmem:[%s5973_s13 + $0xd8] sm:$0xff]  }
 0x3c7   :  { %v4461_v46 = vld [vmem:[%s5973_s13 + $0x18] sm:$0xff]  }
 0x3c8   :  { %v4463_v47 = vld [vmem:[%s5973_s13 + $0x98] sm:$0xff]  }
 0x3c9   :  { %1685 = vmatpush1.bf16.msra.mxu0 %v4436_v48  ;;  %1738 = vmatpush1.bf16.msra.mxu1 %v4439_v49  ;;  %v4464_v48 = vld [vmem:[%s5973_s13 + $0x60] sm:$0xff]  }
 0x3ca   :  { %1686 = vmatprep.subr.bf16.mxu0 %v4444_v50  ;;  %1739 = vmatprep.subr.bf16.mxu1 %v4447_v51  ;;  %v4466_v49 = vld [vmem:[%s5973_s13 + $0xe0] sm:$0xff]  }
 0x3cb   :  { %v4465_v50 = vld [vmem:[%s5973_s13 + $0x20] sm:$0xff]  }
 0x3cc   :  { %v4467_v51 = vld [vmem:[%s5973_s13 + $0xa0] sm:$0xff]  }
 0x3cd   :  { %1687 = vmatpush1.bf16.msra.mxu0 %v4442_v52  ;;  %1740 = vmatpush1.bf16.msra.mxu1 %v4445_v53  ;;  %v4468_v52 = vld [vmem:[%s5973_s13 + $0x68] sm:$0xff]  }
 0x3ce   :  { %4083 = vmatprep.subr.bf16.mxu0 %v4448_v54  ;;  %4111 = vmatprep.subr.bf16.mxu1 %v4450_v55  ;;  %v4469_v53 = vld [vmem:[%s5973_s13 + $0x28] sm:$0xff]  }
 0x3cf   :  { %v4470_v54 = vld [vmem:[%s5973_s13 + $0xe8] sm:$0xff]  }
 0x3d0   :  { %v4471_v55 = vld [vmem:[%s5973_s13 + $0xa8] sm:$0xff]  }
 0x483   :  { %v4043_v56 = vpop.f32.mrb[24].mxu0  ;;  %v4071_v57 = vpop.f32.mrb[16].mxu1 }
 0x484   :  { %v4044_v59 = vpop.f32.mrb[25].mxu0  ;;  %v4072_v60 = vpop.f32.mrb[17].mxu1 }
 0x485   :  { %v4045_v62 = vadd.f32 %v4044_v59, %v4043_v56  ;;  %v4073_v8 = vadd.f32 %v4072_v60, %v4071_v57  ;;  %v4046_v9 = vpop.f32.mrb[26].mxu0  ;;  %v4074_v10 = vpop.f32.mrb[18].mxu1  ;;  %v4472_v56 = vld [vmem:[%s5973_s13 + $0x70] sm:$0xff]   ;;  %v4476_v60 = vld [vmem:[%s5973_s13 + $0x78] sm:$0xff]  }
 0x486   :  { %v4047_v11 = vpop.f32.mrb[27].mxu0  ;;  %v4075_v12 = vpop.f32.mrb[19].mxu1  ;;  %v4473_v57 = vld [vmem:[%s5973_s13 + $0x30] sm:$0xff]  }
 0x487   :  { %v1393_v13 = vadd.f32 %v4045_v62, %v3771_v58  ;;  %v4048_v14 = vadd.f32 %v4047_v11, %v4046_v9  ;;  %v4076_v15 = vadd.f32 %v4075_v12, %v4074_v10  ;;  %v4475_v59 = vld [vmem:[%s5973_s13 + $0xb0] sm:$0xff]   ;;  %v4477_v62 = vld [vmem:[%s5973_s13 + $0x38] sm:$0xff]   ;;  %v4482_v10 = vld [vmem:[%s5975_s15 + $0x4] ss:$8 sps:$4 sm:$0xff]  }
 0x488   :  { %v4479_v9 = vld [vmem:[%s5973_s13 + $0xb8] sm:$0xff]   ;;  %v4506_v11 = vld [vmem:[%s5977_s17 + $0x4] ss:$8 sps:$4 sm:$0xff]   ;;  %v1490_v12 = vld [vmem:[%s5972_s12] sm:$0xf] }
 0x489   :  { %v1442_v16 = vadd.f32 %v4073_v8, %v1393_v13  ;;  %v1396_v17 = vadd.f32 %v4048_v14, %v3771_v58  ;;  %v4478_v8 = vld [vmem:[%s5973_s13 + $0xf8] sm:$0xff]   ;;  %v1495_v13 = vrot.slane %v1490_v12, %v5037_v4  ;;  %v1503_v14 = vrot.slane %v1490_v12, %v5276_v61 }
 0x48b   :  { %v1445_v3 = vadd.f32 %v4076_v15, %v1396_v17  ;;  %v4049_v18 = vpop.f32.mrb[28].mxu0  ;;  %v4077_v0 = vpop.f32.mrb[20].mxu1  ;;  %v1499_v15 = vrot.slane %v1490_v12, %v5043_v6 }
 0x48c   :  { %v4050_v1 = vpop.f32.mrb[29].mxu0  ;;  %v4078_v5 = vpop.f32.mrb[21].mxu1 }
 0x48d   :  { %v1456_v7 = vpack.c.bf16 %v1445_v3, %v1442_v16  ;;  %v4051_v19 = vadd.f32 %v4050_v1, %v4049_v18  ;;  %v4079_v20 = vadd.f32 %v4078_v5, %v4077_v0  ;;  %v4052_v21 = vpop.f32.mrb[30].mxu0  ;;  %v4080_v22 = vpop.f32.mrb[22].mxu1  ;;  %v1507_v16 = vrot.slane %v1490_v12, %v5282_v63 }
 0x48e   :  { %v4053_v25 = vpop.f32.mrb[31].mxu0  ;;  %v4081_v26 = vpop.f32.mrb[23].mxu1 }
 0x48f   :  { %v1401_v29 = vadd.f32 %v4051_v19, %v3771_v58  ;;  %v4054_v30 = vadd.f32 %v4053_v25, %v4052_v21  ;;  %v4082_v32 = vadd.f32 %v4081_v26, %v4080_v22  ;;  %1705 = vmatmul.mubr.bf16.vlgmr.msra.gmra.mrb[32].mxu0 %v1456_v7  ;;  %1758 = vmatmul.mubr.bf16.vlgmr.msra.gmra.mrb[24].mxu1 %v1456_v7 }
 0x490   :  { %1714 = vmatprep.mubr.bf16.mxu0 %v4700_v2  ;;  %1767 = vmatprep.mubr.bf16.mxu1 %v4700_v2 }
 0x491   :  { %v1450_v33 = vadd.f32 %v4079_v20, %v1401_v29  ;;  %v1404_v34 = vadd.f32 %v4054_v30, %v3771_v58  ;;  %4084 = vmatpush3.bf16.msra.mxu0 %v4449_v23  ;;  %4112 = vmatpush3.bf16.msra.mxu1 %v4451_v24  ;;  %v4474_v58 = vld [vmem:[%s5973_s13 + $0xf0] sm:$0xff]  }
 0x492   :  { %4085 = vmatprep.subr.bf16.mxu0 %v4452_v27  ;;  %4113 = vmatprep.subr.bf16.mxu1 %v4454_v28 }
 0x493   :  { %v1453_v40 = vadd.f32 %v4082_v32, %v1404_v34 }
 0x495   :  { %v1457_v41 = vpack.c.bf16 %v1453_v40, %v1450_v33  ;;  %4086 = vmatpush3.bf16.msra.mxu0 %v4453_v35  ;;  %4114 = vmatpush3.bf16.msra.mxu1 %v4455_v36 }
 0x496   :  { %4087 = vmatprep.subr.bf16.mxu0 %v4456_v37  ;;  %4115 = vmatprep.subr.bf16.mxu1 %v4458_v39 }
 0x497   :  { %1715 = vmatmul.mubr.bf16.gmra.mrb[36].mxu0 %v1457_v41  ;;  %1768 = vmatmul.mubr.bf16.gmra.mrb[28].mxu1 %v1457_v41 }
 0x499   :  { %4088 = vmatpush3.bf16.msra.mxu0 %v4457_v42  ;;  %4116 = vmatpush3.bf16.msra.mxu1 %v4459_v43 }
 0x49a   :  { %4089 = vmatprep.subr.bf16.mxu0 %v4460_v44  ;;  %4117 = vmatprep.subr.bf16.mxu1 %v4462_v45 }
 0x49d   :  { %4090 = vmatpush3.bf16.msra.mxu0 %v4461_v46  ;;  %4118 = vmatpush3.bf16.msra.mxu1 %v4463_v47 }
 0x49e   :  { %4091 = vmatprep.subr.bf16.mxu0 %v4464_v48  ;;  %4119 = vmatprep.subr.bf16.mxu1 %v4466_v49 }
 0x4a1   :  { %4092 = vmatpush3.bf16.msra.mxu0 %v4465_v50  ;;  %4120 = vmatpush3.bf16.msra.mxu1 %v4467_v51 }
 0x4a2   :  { %4093 = vmatprep.subr.bf16.mxu0 %v4468_v52  ;;  %4121 = vmatprep.subr.bf16.mxu1 %v4470_v54  ;;  %v4480_v54 = vld [vmem:[%s5975_s15] ss:$8 sps:$4 sm:$0xff]  }
 0x4a5   :  { %4094 = vmatpush3.bf16.msra.mxu0 %v4469_v53  ;;  %4122 = vmatpush3.bf16.msra.mxu1 %v4471_v55  ;;  %v4485_v55 = vld [vmem:[%s5975_s15 + $0x14] ss:$8 sps:$4 sm:$0xff]  }
 0x4a6   :  { %4095 = vmatprep.subr.bf16.mxu0 %v4472_v56  ;;  %4123 = vmatprep.subr.bf16.mxu1 %v4474_v58 }
 0x4a9   :  { %4096 = vmatpush3.bf16.msra.mxu0 %v4473_v57  ;;  %4124 = vmatpush3.bf16.msra.mxu1 %v4475_v59 }
 0x4aa   :  { %4097 = vmatprep.subr.bf16.mxu0 %v4476_v60  ;;  %4125 = vmatprep.subr.bf16.mxu1 %v4478_v8  ;;  %v4504_v8 = vld [vmem:[%s5977_s17] ss:$8 sps:$4 sm:$0xff]  }
 0x4ad   :  { %4098 = vmatpush3.bf16.msra.mxu0 %v4477_v62  ;;  %4126 = vmatpush3.bf16.msra.mxu1 %v4479_v9  ;;  %v4509_v9 = vld [vmem:[%s5977_s17 + $0x14] ss:$8 sps:$4 sm:$0xff]  }
 0x4ae   :  { %2289 = vmatprep.subr.bf16.mxu0 %v4482_v10  ;;  %2566 = vmatprep.subr.bf16.mxu1 %v4506_v11 }
 0x562   :  { %v1706_v17 = vpop.f32.mrb[32].mxu0  ;;  %v1759_v3 = vpop.f32.mrb[24].mxu1 }
 0x563   :  { %v1707_v18 = vadd.f32 %v1706_v17, %v1495_v13  ;;  %v1760_v0 = vadd.f32 %v1759_v3, %v1503_v14  ;;  %v1708_v1 = vpop.f32.mrb[33].mxu0  ;;  %v1761_v5 = vpop.f32.mrb[25].mxu1 }
 0x564   :  { %v1709_v7 = vadd.f32 %v1708_v1, %v1499_v15  ;;  %v1762_v19 = vadd.f32 %v1761_v5, %v1507_v16  ;;  %v1710_v20 = vpop.f32.mrb[34].mxu0  ;;  %v1763_v21 = vpop.f32.mrb[26].mxu1 }
 0x565   :  { %v1778_v22 = vmul.f32 0.01, %v1707_v18  ;;  %v1780_v23 = vmul.f32 0.01, %v1760_v0  ;;  %v1711_v24 = vadd.f32 %v1710_v20, %v1495_v13  ;;  %v1764_v25 = vadd.f32 %v1763_v21, %v1503_v14  ;;  %v1712_v26 = vpop.f32.mrb[35].mxu0  ;;  %v1765_v27 = vpop.f32.mrb[27].mxu1 }
 0x566   :  { %v1779_v28 = vmul.f32 0.01, %v1709_v7  ;;  %v1781_v29 = vmul.f32 0.01, %v1762_v19  ;;  %v1713_v30 = vadd.f32 %v1712_v26, %v1499_v15  ;;  %v1766_v32 = vadd.f32 %v1765_v27, %v1507_v16  ;;  %v4483_v21 = vld [vmem:[%s5975_s15 + $0x10] ss:$8 sps:$4 sm:$0xff]  }
 0x567   :  { %v1782_v33 = vmul.f32 0.01, %v1711_v24  ;;  %v1784_v34 = vmul.f32 0.01, %v1764_v25  ;;  %v1794_v37 = vmax.f32 %v1707_v18, %v1778_v22  ;;  %v1796_v39 = vmax.f32 %v1760_v0, %v1780_v23  ;;  %v4512_v26 = vld [vmem:[%s5977_s17 + $0x24] ss:$8 sps:$4 sm:$0xff]  }
 0x568   :  { %v1783_v35 = vmul.f32 0.01, %v1713_v30  ;;  %v1785_v36 = vmul.f32 0.01, %v1766_v32  ;;  %v1795_v42 = vmax.f32 %v1709_v7, %v1779_v28  ;;  %v1797_v43 = vmax.f32 %v1762_v19, %v1781_v29 }
 0x569   :  { %v1798_v40 = vmax.f32 %v1711_v24, %v1782_v33  ;;  %v1800_v41 = vmax.f32 %v1764_v25, %v1784_v34  ;;  %v4488_v25 = vld [vmem:[%s5975_s15 + $0x24] ss:$8 sps:$4 sm:$0xff]  }
 0x56a   :  { %v1799_v44 = vmax.f32 %v1713_v30, %v1783_v35  ;;  %v1801_v45 = vmax.f32 %v1766_v32, %v1785_v36  ;;  %v1716_v46 = vpop.f32.mrb[36].mxu0  ;;  %v1769_v47 = vpop.f32.mrb[28].mxu1  ;;  %v4486_v36 = vld [vmem:[%s5975_s15 + $0x20] ss:$8 sps:$4 sm:$0xff]  }
 0x56b   :  { %v1810_v48 = vpack.c.bf16 %v1798_v40, %v1794_v37  ;;  %v1812_v49 = vpack.c.bf16 %v1800_v41, %v1796_v39  ;;  %v1717_v50 = vadd.f32 %v1716_v46, %v1495_v13  ;;  %v1770_v51 = vadd.f32 %v1769_v47, %v1503_v14  ;;  %v1718_v52 = vpop.f32.mrb[37].mxu0  ;;  %v1771_v53 = vpop.f32.mrb[29].mxu1  ;;  %v4491_v37 = vld [vmem:[%s5975_s15 + $0x34] ss:$8 sps:$4 sm:$0xff]   ;;  %v4510_v39 = vld [vmem:[%s5977_s17 + $0x20] ss:$8 sps:$4 sm:$0xff]  }
 0x56c   :  { %v1719_v56 = vadd.f32 %v1718_v52, %v1499_v15  ;;  %v1772_v57 = vadd.f32 %v1771_v53, %v1507_v16  ;;  %v1720_v58 = vpop.f32.mrb[38].mxu0  ;;  %v1773_v59 = vpop.f32.mrb[30].mxu1  ;;  %v1811_v60 = vpack.c.bf16 %v1799_v44, %v1795_v42  ;;  %v1813_v62 = vpack.c.bf16 %v1801_v45, %v1797_v43  ;;  %v4515_v40 = vld [vmem:[%s5977_s17 + $0x34] ss:$8 sps:$4 sm:$0xff]   ;;  %v4489_v41 = vld [vmem:[%s5975_s15 + $0x30] ss:$8 sps:$4 sm:$0xff]  }
 0x56d   :  { %v1786_v10 = vmul.f32 0.01, %v1717_v50  ;;  %v1788_v11 = vmul.f32 0.01, %v1770_v51  ;;  %v1721_v12 = vadd.f32 %v1720_v58, %v1495_v13  ;;  %v1774_v17 = vadd.f32 %v1773_v59, %v1503_v14  ;;  %v1722_v3 = vpop.f32.mrb[39].mxu0  ;;  %v1775_v18 = vpop.f32.mrb[31].mxu1 }
 0x56e   :  { %v1787_v0 = vmul.f32 0.01, %v1719_v56  ;;  %v1789_v1 = vmul.f32 0.01, %v1772_v57  ;;  %v1723_v5 = vadd.f32 %v1722_v3, %v1499_v15  ;;  %v1776_v7 = vadd.f32 %v1775_v18, %v1507_v16  ;;  %2113 = vmatprep.mubr.bf16.mxu0 %v1811_v60  ;;  %2162 = vmatprep.mubr.bf16.mxu1 %v1813_v62  ;;  %v4507_v14 = vld [vmem:[%s5977_s17 + $0x10] ss:$8 sps:$4 sm:$0xff]  }
 0x56f   :  { %v1790_v19 = vmul.f32 0.01, %v1721_v12  ;;  %v1792_v20 = vmul.f32 0.01, %v1774_v17  ;;  %2114 = vmatmul.mubr.bf16.vlgmr.msra.gmra.mrb[40].mxu0 %v1810_v48  ;;  %2163 = vmatmul.mubr.bf16.vlgmr.msra.gmra.mrb[32].mxu1 %v1812_v49  ;;  %v1802_v22 = vmax.f32 %v1717_v50, %v1786_v10  ;;  %v1804_v15 = vmax.f32 %v1770_v51, %v1788_v11  ;;  %v4494_v42 = vld [vmem:[%s5975_s15 + $0x44] ss:$8 sps:$4 sm:$0xff]  }
 0x570   :  { %v1791_v23 = vmul.f32 0.01, %v1723_v5  ;;  %v1793_v13 = vmul.f32 0.01, %v1776_v7  ;;  %2290 = vmatpush1.bf16.msra.mxu0 %v4480_v54  ;;  %2567 = vmatpush1.bf16.msra.mxu1 %v4504_v8  ;;  %v1803_v27 = vmax.f32 %v1719_v56, %v1787_v0  ;;  %v1805_v28 = vmax.f32 %v1772_v57, %v1789_v1  ;;  %v4513_v43 = vld [vmem:[%s5977_s17 + $0x30] ss:$8 sps:$4 sm:$0xff]  }
 0x571   :  { %v1806_v16 = vmax.f32 %v1721_v12, %v1790_v19  ;;  %v1808_v24 = vmax.f32 %v1774_v17, %v1792_v20  ;;  %2291 = vmatprep.subr.bf16.mxu0 %v4485_v55  ;;  %2568 = vmatprep.subr.bf16.mxu1 %v4509_v9  ;;  %v4518_v44 = vld [vmem:[%s5977_s17 + $0x44] ss:$8 sps:$4 sm:$0xff]   ;;  %v4492_v45 = vld [vmem:[%s5975_s15 + $0x40] ss:$8 sps:$4 sm:$0xff]   ;;  %v4497_v46 = vld [vmem:[%s5975_s15 + $0x54] ss:$8 sps:$4 sm:$0xff]  }
 0x572   :  { %v1807_v29 = vmax.f32 %v1723_v5, %v1791_v23  ;;  %v1809_v30 = vmax.f32 %v1776_v7, %v1793_v13  ;;  %v4516_v47 = vld [vmem:[%s5977_s17 + $0x40] ss:$8 sps:$4 sm:$0xff]   ;;  %v4495_v48 = vld [vmem:[%s5975_s15 + $0x50] ss:$8 sps:$4 sm:$0xff]   ;;  %v4500_v49 = vld [vmem:[%s5975_s15 + $0x64] ss:$8 sps:$4 sm:$0xff]  }
 0x573   :  { %v1814_v32 = vpack.c.bf16 %v1806_v16, %v1802_v22  ;;  %v1816_v33 = vpack.c.bf16 %v1808_v24, %v1804_v15  ;;  %v4498_v50 = vld [vmem:[%s5975_s15 + $0x60] ss:$8 sps:$4 sm:$0xff]   ;;  %v4503_v51 = vld [vmem:[%s5975_s15 + $0x74] ss:$8 sps:$4 sm:$0xff]   ;;  %v4501_v52 = vld [vmem:[%s5975_s15 + $0x70] ss:$8 sps:$4 sm:$0xff]  }
 0x574   :  { %2292 = vmatpush1.bf16.msra.mxu0 %v4483_v21  ;;  %v1815_v34 = vpack.c.bf16 %v1807_v29, %v1803_v27  ;;  %v1817_v35 = vpack.c.bf16 %v1809_v30, %v1805_v28  ;;  %2569 = vmatpush1.bf16.msra.mxu1 %v4507_v14  ;;  %v4521_v53 = vld [vmem:[%s5977_s17 + $0x54] ss:$8 sps:$4 sm:$0xff]   ;;  %v4519_v54 = vld [vmem:[%s5977_s17 + $0x50] ss:$8 sps:$4 sm:$0xff]   ;;  %v4524_v55 = vld [vmem:[%s5977_s17 + $0x64] ss:$8 sps:$4 sm:$0xff]  }
 0x575   :  { %2293 = vmatprep.subr.bf16.mxu0 %v4488_v25  ;;  %2570 = vmatprep.subr.bf16.mxu1 %v4512_v26  ;;  %v4525_v56 = vld [vmem:[%s5977_s17 + $0x70] ss:$8 sps:$4 sm:$0xff]   ;;  %v4530_v57 = vld [vmem:[%s5977_s17 + $0x84] ss:$8 sps:$4 sm:$0xff]   ;;  %v4528_v58 = vld [vmem:[%s5977_s17 + $0x80] ss:$8 sps:$4 sm:$0xff]  }
 0x576   :  { %2121 = vmatprep.mubr.bf16.mxu0 %v1815_v34  ;;  %2170 = vmatprep.mubr.bf16.mxu1 %v1817_v35  ;;  %v4533_v59 = vld [vmem:[%s5977_s17 + $0x94] ss:$8 sps:$4 sm:$0xff]   ;;  %v4531_v60 = vld [vmem:[%s5977_s17 + $0x90] ss:$8 sps:$4 sm:$0xff]   ;;  %v4534_v62 = vld [vmem:[%s5977_s17 + $0xa0] ss:$8 sps:$4 sm:$0xff]  }
 0x577   :  { %2122 = vmatmul.mubr.bf16.gmra.mrb[44].mxu0 %v1814_v32  ;;  %2171 = vmatmul.mubr.bf16.gmra.mrb[36].mxu1 %v1816_v33  ;;  %v4536_v8 = vld [vmem:[%s5977_s17 + $0xa4] ss:$8 sps:$4 sm:$0xff]   ;;  %v4537_v9 = vld [vmem:[%s5977_s17 + $0xb0] ss:$8 sps:$4 sm:$0xff]   ;;  %v4539_v10 = vld [vmem:[%s5977_s17 + $0xb4] ss:$8 sps:$4 sm:$0xff]  }
 0x578   :  { %2294 = vmatpush1.bf16.msra.mxu0 %v4486_v36  ;;  %2321 = vmatprep.mubr.bf16.mxu0 %v4700_v2  ;;  %v4542_v11 = vld [vmem:[%s5977_s17 + $0xc4] ss:$8 sps:$4 sm:$0xff]   ;;  %v4540_v12 = vld [vmem:[%s5977_s17 + $0xc0] ss:$8 sps:$4 sm:$0xff]   ;;  %v4545_v17 = vld [vmem:[%s5977_s17 + $0xd4] ss:$8 sps:$4 sm:$0xff]  }
 0x579   :  { %2295 = vmatprep.subr.bf16.mxu0 %v4491_v37  ;;  %2571 = vmatpush1.bf16.msra.mxu1 %v4510_v39  ;;  %v4543_v3 = vld [vmem:[%s5977_s17 + $0xd0] ss:$8 sps:$4 sm:$0xff]   ;;  %v4548_v18 = vld [vmem:[%s5977_s17 + $0xe4] ss:$8 sps:$4 sm:$0xff]   ;;  %v4546_v0 = vld [vmem:[%s5977_s17 + $0xe0] ss:$8 sps:$4 sm:$0xff]  }
 0x57a   :  { %2572 = vmatprep.subr.bf16.mxu1 %v4515_v40  ;;  %v4551_v1 = vld [vmem:[%s5977_s17 + $0xf4] ss:$8 sps:$4 sm:$0xff]   ;;  %v4549_v5 = vld [vmem:[%s5977_s17 + $0xf0] ss:$8 sps:$4 sm:$0xff]   ;;  %v3836_v20 = vld [vmem:[%s5974_s14] ss:$0 sm:$0xff] }
 0x57c   :  { %2296 = vmatpush1.bf16.msra.mxu0 %v4489_v41 }
 0x57d   :  { %2297 = vmatprep.subr.bf16.mxu0 %v4494_v42  ;;  %2573 = vmatpush1.bf16.msra.mxu1 %v4513_v43 }
 0x57e   :  { %2574 = vmatprep.subr.bf16.mxu1 %v4518_v44 }
 0x580   :  { %2298 = vmatpush1.bf16.msra.mxu0 %v4492_v45 }
 0x581   :  { %2299 = vmatprep.subr.bf16.mxu0 %v4497_v46  ;;  %2575 = vmatpush1.bf16.msra.mxu1 %v4516_v47 }
 0x582   :  { %2576 = vmatprep.subr.bf16.mxu1 %v4521_v53  ;;  %v2197_v53 = vld [vmem:[%s5976_s16] sm:$0x3] }
 0x584   :  { %2300 = vmatpush1.bf16.msra.mxu0 %v4495_v48 }
 0x585   :  { %2301 = vmatprep.subr.bf16.mxu0 %v4500_v49  ;;  %2577 = vmatpush1.bf16.msra.mxu1 %v4519_v54  ;;  %v2202_v54 = vrot.slane %v2197_v53, %v5037_v4 }
 0x586   :  { %2578 = vmatprep.subr.bf16.mxu1 %v4524_v55  ;;  %v2206_v55 = vrot.slane %v2197_v53, %v5043_v6  ;;  %v4570_v53 = vld [vmem:[%s5981_s21 + $0x4] ss:$16 sps:$4 sm:$0xff]  }
 0x588   :  { %2302 = vmatpush1.bf16.msra.mxu0 %v4498_v50 }
 0x589   :  { %2303 = vmatprep.subr.bf16.mxu0 %v4503_v51 }
 0x58c   :  { %2304 = vmatpush1.bf16.msra.mxu0 %v4501_v52 }
 0x58f   :  { %2322 = vmatmul.mubr.bf16.vlgmr.msra.gmra.mrb[48].mxu0 %v4931_v31  ;;  %v4522_v31 = vld [vmem:[%s5977_s17 + $0x60] ss:$8 sps:$4 sm:$0xff]  }
 0x590   :  { %2331 = vmatprep.mubr.bf16.mxu0 %v4700_v2  ;;  %2579 = vmatpush1.bf16.msra.mxu1 %v4522_v31 }
 0x597   :  { %2332 = vmatmul.mubr.bf16.gmra.mrb[52].mxu0 %v4953_v38  ;;  %v4527_v38 = vld [vmem:[%s5977_s17 + $0x74] ss:$8 sps:$4 sm:$0xff]  }
 0x598   :  { %2580 = vmatprep.subr.bf16.mxu1 %v4527_v38 }
 0x599   :  { %2581 = vmatpush1.bf16.msra.mxu1 %v4525_v56 }
 0x59a   :  { %2582 = vmatprep.subr.bf16.mxu1 %v4530_v57 }
 0x59d   :  { %2583 = vmatpush1.bf16.msra.mxu1 %v4528_v58 }
 0x59e   :  { %2584 = vmatprep.subr.bf16.mxu1 %v4533_v59 }
 0x5a1   :  { %2585 = vmatpush1.bf16.msra.mxu1 %v4531_v60 }
 0x5a2   :  { %2586 = vmatprep.subr.bf16.mxu1 %v4536_v8 }
 0x5a5   :  { %2587 = vmatpush1.bf16.msra.mxu1 %v4534_v62 }
 0x5a6   :  { %2588 = vmatprep.subr.bf16.mxu1 %v4539_v10 }
 0x5a9   :  { %2589 = vmatpush1.bf16.msra.mxu1 %v4537_v9 }
 0x5aa   :  { %2590 = vmatprep.subr.bf16.mxu1 %v4542_v11 }
 0x5ad   :  { %2591 = vmatpush1.bf16.msra.mxu1 %v4540_v12  ;;  %v4552_v12 = vld [vmem:[%s5979_s19 + $0x40] sm:$0xff]  }
 0x5ae   :  { %2592 = vmatprep.subr.bf16.mxu1 %v4545_v17  ;;  %v4553_v17 = vld [vmem:[%s5979_s19] sm:$0xff]   ;;  %4139 = vmatprep.subr.bf16.mxu0 %v4552_v12 }
 0x5af   :  { %4140 = vmatpush3.bf16.msra.mxu0 %v4553_v17 }
 0x5b1   :  { %2593 = vmatpush1.bf16.msra.mxu1 %v4543_v3  ;;  %v4554_v3 = vld [vmem:[%s5979_s19 + $0x48] sm:$0xff]  }
 0x5b2   :  { %2594 = vmatprep.subr.bf16.mxu1 %v4548_v18  ;;  %4141 = vmatprep.subr.bf16.mxu0 %v4554_v3 }
 0x5b5   :  { %2595 = vmatpush1.bf16.msra.mxu1 %v4546_v0 }
 0x5b6   :  { %2596 = vmatprep.subr.bf16.mxu1 %v4551_v1 }
 0x5b9   :  { %2597 = vmatpush1.bf16.msra.mxu1 %v4549_v5 }
 0x642   :  { %v4099_v7 = vpop.f32.mrb[40].mxu0  ;;  %v4127_v19 = vpop.f32.mrb[32].mxu1 }
 0x643   :  { %v4100_v21 = vpop.f32.mrb[41].mxu0  ;;  %v4128_v22 = vpop.f32.mrb[33].mxu1 }
 0x644   :  { %v4101_v23 = vadd.f32 %v4100_v21, %v4099_v7  ;;  %v4129_v13 = vadd.f32 %v4128_v22, %v4127_v19  ;;  %v4102_v14 = vpop.f32.mrb[42].mxu0  ;;  %v4130_v15 = vpop.f32.mrb[34].mxu1  ;;  %v4555_v22 = vld [vmem:[%s5979_s19 + $0x8] sm:$0xff]  }
 0x645   :  { %v4103_v16 = vpop.f32.mrb[43].mxu0  ;;  %v4131_v24 = vpop.f32.mrb[35].mxu1  ;;  %4142 = vmatpush3.bf16.msra.mxu0 %v4555_v22 }
 0x646   :  { %v2116_v25 = vadd.f32 %v4101_v23, %v3836_v20  ;;  %v4104_v26 = vadd.f32 %v4103_v16, %v4102_v14  ;;  %v4132_v27 = vadd.f32 %v4131_v24, %v4130_v15  ;;  %v4556_v15 = vld [vmem:[%s5979_s19 + $0x50] sm:$0xff]  }
 0x647   :  { %4143 = vmatprep.subr.bf16.mxu0 %v4556_v15 }
 0x648   :  { %v2119_v28 = vadd.f32 %v4104_v26, %v3836_v20  ;;  %v5639_v29 = vadd.f32 %v4129_v13, %v2116_v25 }
 0x64a   :  { %v5641_v30 = vadd.f32 %v4132_v27, %v2119_v28  ;;  %v4105_v32 = vpop.f32.mrb[44].mxu0  ;;  %v4133_v33 = vpop.f32.mrb[36].mxu1  ;;  %v3546_v34 = vmul.f32 %v5639_v29, %v5639_v29 }
 0x64b   :  { %v4106_v35 = vpop.f32.mrb[45].mxu0  ;;  %v4134_v36 = vpop.f32.mrb[37].mxu1 }
 0x64c   :  { %v4107_v37 = vadd.f32 %v4106_v35, %v4105_v32  ;;  %v4135_v39 = vadd.f32 %v4134_v36, %v4133_v33  ;;  %v4108_v40 = vpop.f32.mrb[46].mxu0  ;;  %v4136_v41 = vpop.f32.mrb[38].mxu1  ;;  %3550 = vadd.xlane.f32.xlu0 %v3546_v34  ;;  %v3547_v47 = vmul.f32 %v5641_v30, %v5641_v30  ;;  %v4557_v32 = vld [vmem:[%s5979_s19 + $0x10] sm:$0xff]   ;;  %v4558_v34 = vld [vmem:[%s5979_s19 + $0x58] sm:$0xff]  }
 0x64d   :  { %v4109_v42 = vpop.f32.mrb[47].mxu0  ;;  %v4137_v43 = vpop.f32.mrb[39].mxu1  ;;  %4144 = vmatpush3.bf16.msra.mxu0 %v4557_v32 }
 0x64e   :  { %v2124_v44 = vadd.f32 %v4107_v37, %v3836_v20  ;;  %v4110_v45 = vadd.f32 %v4109_v42, %v4108_v40  ;;  %v4138_v46 = vadd.f32 %v4137_v43, %v4136_v41  ;;  %v4559_v41 = vld [vmem:[%s5979_s19 + $0x18] sm:$0xff]   ;;  %4145 = vmatprep.subr.bf16.mxu0 %v4558_v34  ;;  %v4560_v43 = vld [vmem:[%s5979_s19 + $0x60] sm:$0xff]  }
 0x64f   :  { %v4568_v34 = vld [vmem:[%s5981_s21] ss:$16 sps:$4 sm:$0xff]  }
 0x650   :  { %v2127_v48 = vadd.f32 %v4110_v45, %v3836_v20  ;;  %3552 = vadd.xlane.f32.xlu0 %v3547_v47  ;;  %v5647_v49 = vadd.f32 %v4135_v39, %v2124_v44  ;;  %v4561_v44 = vld [vmem:[%s5979_s19 + $0x20] sm:$0xff]   ;;  %v4562_v45 = vld [vmem:[%s5979_s19 + $0x68] sm:$0xff]   ;;  %v4564_v47 = vld [vmem:[%s5979_s19 + $0x70] sm:$0xff]  }
 0x651   :  { %4146 = vmatpush3.bf16.msra.mxu0 %v4559_v41 }
 0x652   :  { %v5649_v50 = vadd.f32 %v4138_v46, %v2127_v48  ;;  %v3548_v51 = vmul.f32 %v5647_v49, %v5647_v49  ;;  %4147 = vmatprep.subr.bf16.mxu0 %v4560_v43  ;;  %v4563_v46 = vld [vmem:[%s5979_s19 + $0x28] sm:$0xff]   ;;  %v4565_v48 = vld [vmem:[%s5979_s19 + $0x30] sm:$0xff]  }
 0x654   :  { %3554 = vadd.xlane.f32.xlu1 %v3548_v51  ;;  %v3549_v52 = vmul.f32 %v5649_v50, %v5649_v50  ;;  %v4566_v51 = vld [vmem:[%s5979_s19 + $0x78] sm:$0xff]  }
 0x655   :  { %4148 = vmatpush3.bf16.msra.mxu0 %v4561_v44  ;;  %v4574_v44 = vld [vmem:[%s5981_s21 + $0x20] ss:$16 sps:$4 sm:$0xff]  }
 0x656   :  { %4149 = vmatprep.subr.bf16.mxu0 %v4562_v45 }
 0x658   :  { %3556 = vadd.xlane.f32.xlu1 %v3549_v52  ;;  %v4567_v52 = vld [vmem:[%s5979_s19 + $0x38] sm:$0xff]  }
 0x659   :  { %4150 = vmatpush3.bf16.msra.mxu0 %v4563_v46 }
 0x65a   :  { %4151 = vmatprep.subr.bf16.mxu0 %v4564_v47  ;;  %v4582_v47 = vld [vmem:[%s5981_s21 + $0x44] ss:$16 sps:$4 sm:$0xff]  }
 0x65d   :  { %4152 = vmatpush3.bf16.msra.mxu0 %v4565_v48 }
 0x65e   :  { %4153 = vmatprep.subr.bf16.mxu0 %v4566_v51 }
 0x661   :  { %4154 = vmatpush3.bf16.msra.mxu0 %v4567_v52 }
 0x662   :  { %v2323_v31 = vpop.f32.mrb[48].mxu0  ;;  %3039 = vmatprep.subr.bf16.mxu0 %v4570_v53 }
 0x663   :  { %v2324_v38 = vadd.f32 %v2323_v31, %v2202_v54  ;;  %v2325_v56 = vpop.f32.mrb[49].mxu0  ;;  %v4579_v31 = vld [vmem:[%s5981_s21 + $0x2c] ss:$16 sps:$4 sm:$0xff]  }
 0x664   :  { %v2326_v57 = vadd.f32 %v2325_v56, %v2206_v55  ;;  %v2327_v58 = vpop.f32.mrb[50].mxu0  ;;  %v4585_v56 = vld [vmem:[%s5981_s21 + $0x4c] ss:$16 sps:$4 sm:$0xff]  }
 0x665   :  { %v2342_v59 = vmul.f32 0.01, %v2324_v38  ;;  %v2328_v60 = vadd.f32 %v2327_v58, %v2202_v54  ;;  %v2329_v62 = vpop.f32.mrb[51].mxu0  ;;  %v4591_v58 = vld [vmem:[%s5981_s21 + $0x6c] ss:$16 sps:$4 sm:$0xff]  }
 0x666   :  { %v2343_v8 = vmul.f32 0.01, %v2326_v57  ;;  %v2330_v9 = vadd.f32 %v2329_v62, %v2206_v55  ;;  %v4595_v62 = vld [vmem:[%s5981_s21 + $0x88] ss:$16 sps:$4 sm:$0xff]  }
 0x667   :  { %v2344_v10 = vmul.f32 0.01, %v2328_v60  ;;  %v2350_v18 = vmax.f32 %v2324_v38, %v2342_v59  ;;  %v4577_v38 = vld [vmem:[%s5981_s21 + $0x28] ss:$16 sps:$4 sm:$0xff]  }
 0x668   :  { %v2345_v11 = vmul.f32 0.01, %v2330_v9  ;;  %v2351_v1 = vmax.f32 %v2326_v57, %v2343_v8  ;;  %v4583_v57 = vld [vmem:[%s5981_s21 + $0x48] ss:$16 sps:$4 sm:$0xff]   ;;  %v4603_v8 = vld [vmem:[%s5981_s21 + $0xac] ss:$16 sps:$4 sm:$0xff]  }
 0x669   :  { %v2352_v0 = vmax.f32 %v2328_v60, %v2344_v10  ;;  %v4589_v59 = vld [vmem:[%s5981_s21 + $0x68] ss:$16 sps:$4 sm:$0xff]   ;;  %v4597_v60 = vld [vmem:[%s5981_s21 + $0x8c] ss:$16 sps:$4 sm:$0xff]   ;;  %v2394_v10 = vld [vmem:[%s5978_s18] sm:$0x3] }
 0x66a   :  { %v2353_v5 = vmax.f32 %v2330_v9, %v2345_v11  ;;  %v2333_v7 = vpop.f32.mrb[52].mxu0  ;;  %v4601_v9 = vld [vmem:[%s5981_s21 + $0xa8] ss:$16 sps:$4 sm:$0xff]   ;;  %v2399_v11 = vrot.slane %v2394_v10, %v5037_v4  ;;  %v2403_v12 = vrot.slane %v2394_v10, %v5043_v6  ;;  %v4615_v10 = vld [vmem:[%s5981_s21 + $0xec] ss:$16 sps:$4 sm:$0xff]  }
 0x66b   :  { %v2358_v19 = vpack.c.bf16 %v2352_v0, %v2350_v18  ;;  %v2334_v20 = vadd.f32 %v2333_v7, %v2202_v54  ;;  %v2335_v21 = vpop.f32.mrb[53].mxu0 }
 0x66c   :  { %v2336_v23 = vadd.f32 %v2335_v21, %v2206_v55  ;;  %v2337_v13 = vpop.f32.mrb[54].mxu0  ;;  %v2359_v14 = vpack.c.bf16 %v2353_v5, %v2351_v1 }
 0x66d   :  { %v2346_v16 = vmul.f32 0.01, %v2334_v20  ;;  %v2338_v24 = vadd.f32 %v2337_v13, %v2202_v54  ;;  %v2339_v25 = vpop.f32.mrb[55].mxu0  ;;  %v4571_v54 = vld [vmem:[%s5981_s21 + $0x8] ss:$16 sps:$4 sm:$0xff]  }
 0x66e   :  { %v2347_v26 = vmul.f32 0.01, %v2336_v23  ;;  %v2340_v27 = vadd.f32 %v2339_v25, %v2206_v55  ;;  %2598 = vmatprep.mubr.bf16.mxu1 %v2359_v14  ;;  %v4573_v55 = vld [vmem:[%s5981_s21 + $0xc] ss:$16 sps:$4 sm:$0xff]  }
 0x66f   :  { %v2348_v28 = vmul.f32 0.01, %v2338_v24  ;;  %2599 = vmatmul.mubr.bf16.vlgmr.msra.gmra.mrb[40].mxu1 %v2358_v19  ;;  %v2354_v35 = vmax.f32 %v2334_v20, %v2346_v16  ;;  %3092 = vmatprep.subr.bf16.mxu1 %v4573_v55  ;;  %v4588_v55 = vld [vmem:[%s5981_s21 + $0x64] ss:$16 sps:$4 sm:$0xff]  }
 0x670   :  { %v2349_v33 = vmul.f32 0.01, %v2340_v27  ;;  %v2355_v37 = vmax.f32 %v2336_v23, %v2347_v26  ;;  %3093 = vmatpush1.bf16.msra.mxu1 %v4571_v54  ;;  %v4580_v54 = vld [vmem:[%s5981_s21 + $0x40] ss:$16 sps:$4 sm:$0xff]  }
 0x671   :  { %v2356_v36 = vmax.f32 %v2338_v24, %v2348_v28  ;;  %3094 = vmatprep.subr.bf16.mxu1 %v4579_v31  ;;  %v4586_v31 = vld [vmem:[%s5981_s21 + $0x60] ss:$16 sps:$4 sm:$0xff]  }
 0x672   :  { %v2357_v39 = vmax.f32 %v2340_v27, %v2349_v33 }
 0x673   :  { %v2360_v40 = vpack.c.bf16 %v2356_v36, %v2354_v35 }
 0x674   :  { %v2361_v42 = vpack.c.bf16 %v2357_v39, %v2355_v37  ;;  %3095 = vmatpush1.bf16.msra.mxu1 %v4577_v38  ;;  %v4576_v39 = vld [vmem:[%s5981_s21 + $0x24] ss:$16 sps:$4 sm:$0xff]  }
 0x675   :  { %3096 = vmatprep.subr.bf16.mxu1 %v4585_v56  ;;  %v4594_v38 = vld [vmem:[%s5981_s21 + $0x84] ss:$16 sps:$4 sm:$0xff]   ;;  %v4592_v56 = vld [vmem:[%s5981_s21 + $0x80] ss:$16 sps:$4 sm:$0xff]  }
 0x676   :  { %2608 = vmatprep.mubr.bf16.mxu1 %v2361_v42 }
 0x677   :  { %2609 = vmatmul.mubr.bf16.gmra.mrb[44].mxu1 %v2360_v40 }
 0x678   :  { %3124 = vmatprep.mubr.bf16.mxu1 %v4700_v2  ;;  %3097 = vmatpush1.bf16.msra.mxu1 %v4583_v57  ;;  %v4600_v57 = vld [vmem:[%s5981_s21 + $0xa4] ss:$16 sps:$4 sm:$0xff]  }
 0x679   :  { %3098 = vmatprep.subr.bf16.mxu1 %v4591_v58  ;;  %v4598_v58 = vld [vmem:[%s5981_s21 + $0xa0] ss:$16 sps:$4 sm:$0xff]  }
 0x67c   :  { %3099 = vmatpush1.bf16.msra.mxu1 %v4589_v59  ;;  %v4606_v59 = vld [vmem:[%s5981_s21 + $0xc4] ss:$16 sps:$4 sm:$0xff]  }
 0x67d   :  { %3100 = vmatprep.subr.bf16.mxu1 %v4597_v60  ;;  %v4609_v60 = vld [vmem:[%s5981_s21 + $0xcc] ss:$16 sps:$4 sm:$0xff]  }
 0x680   :  { %3101 = vmatpush1.bf16.msra.mxu1 %v4595_v62  ;;  %v4604_v62 = vld [vmem:[%s5981_s21 + $0xc0] ss:$16 sps:$4 sm:$0xff]  }
 0x681   :  { %3102 = vmatprep.subr.bf16.mxu1 %v4603_v8  ;;  %v4607_v8 = vld [vmem:[%s5981_s21 + $0xc8] ss:$16 sps:$4 sm:$0xff]  }
 0x684   :  { %3103 = vmatpush1.bf16.msra.mxu1 %v4601_v9  ;;  %v4612_v9 = vld [vmem:[%s5981_s21 + $0xe4] ss:$16 sps:$4 sm:$0xff]  }
 0x685   :  { %3104 = vmatprep.subr.bf16.mxu1 %v4609_v60  ;;  %v4646_v60 = vld [vmem:[%s5983_s23 + $0x38] sm:$0xff]  }
 0x688   :  { %3105 = vmatpush1.bf16.msra.mxu1 %v4607_v8  ;;  %v2857_v8 = vld [vmem:[%s5982_s22] sm:$0xf] }
 0x689   :  { %3106 = vmatprep.subr.bf16.mxu1 %v4615_v10  ;;  %v2870_v10 = vrot.slane %v2857_v8, %v5276_v61 }
 0x742   :  { %v2600_v17 = vpop.f32.mrb[40].mxu1 }
 0x743   :  { %v2601_v3 = vadd.f32 %v2600_v17, %v2399_v11  ;;  %v2602_v18 = vpop.f32.mrb[41].mxu1  ;;  %v4616_v17 = vld [vmem:[%s5983_s23 + $0x40] sm:$0xff]  }
 0x744   :  { %v2603_v0 = vadd.f32 %v2602_v18, %v2403_v12  ;;  %v2604_v1 = vpop.f32.mrb[42].mxu1 }
 0x745   :  { %v2619_v5 = vmul.f32 0.01, %v2601_v3  ;;  %v2605_v7 = vadd.f32 %v2604_v1, %v2399_v11  ;;  %v2606_v19 = vpop.f32.mrb[43].mxu1 }
 0x746   :  { %v2620_v20 = vmul.f32 0.01, %v2603_v0  ;;  %v2607_v21 = vadd.f32 %v2606_v19, %v2403_v12 }
 0x747   :  { %v2621_v22 = vmul.f32 0.01, %v2605_v7  ;;  %v2627_v13 = vmax.f32 %v2601_v3, %v2619_v5  ;;  %v4617_v3 = vld [vmem:[%s5983_s23 + $0xc0] sm:$0xff]  }
 0x748   :  { %v2622_v23 = vmul.f32 0.01, %v2607_v21  ;;  %v2628_v15 = vmax.f32 %v2603_v0, %v2620_v20 }
 0x749   :  { %v2629_v14 = vmax.f32 %v2605_v7, %v2621_v22  ;;  %v3917_v7 = vld [vmem:[%s5980_s20] ss:$0 sm:$0xff] }
 0x74a   :  { %v2630_v16 = vmax.f32 %v2607_v21, %v2622_v23  ;;  %v2610_v24 = vpop.f32.mrb[44].mxu1 }
 0x74b   :  { %v2635_v25 = vpack.c.bf16 %v2629_v14, %v2627_v13  ;;  %v2611_v26 = vadd.f32 %v2610_v24, %v2399_v11  ;;  %v2612_v27 = vpop.f32.mrb[45].mxu1  ;;  %v4618_v14 = vld [vmem:[%s5983_s23] sm:$0xff]   ;;  %v4620_v24 = vld [vmem:[%s5983_s23 + $0x48] sm:$0xff]  }
 0x74c   :  { %v2613_v28 = vadd.f32 %v2612_v27, %v2403_v12  ;;  %v2614_v32 = vpop.f32.mrb[46].mxu1  ;;  %v2636_v33 = vpack.c.bf16 %v2630_v16, %v2628_v15  ;;  %v4619_v15 = vld [vmem:[%s5983_s23 + $0x80] sm:$0xff]  }
 0x74d   :  { %v2623_v35 = vmul.f32 0.01, %v2611_v26  ;;  %v2615_v36 = vadd.f32 %v2614_v32, %v2399_v11  ;;  %v2616_v37 = vpop.f32.mrb[47].mxu1  ;;  %v4610_v11 = vld [vmem:[%s5981_s21 + $0xe0] ss:$16 sps:$4 sm:$0xff]  }
 0x74e   :  { %v2624_v40 = vmul.f32 0.01, %v2613_v28  ;;  %v2617_v41 = vadd.f32 %v2616_v37, %v2403_v12  ;;  %2806 = vmatprep.mubr.bf16.mxu0 %v2636_v33  ;;  %v4613_v12 = vld [vmem:[%s5981_s21 + $0xe8] ss:$16 sps:$4 sm:$0xff]  }
 0x74f   :  { %v2625_v42 = vmul.f32 0.01, %v2615_v36  ;;  %2807 = vmatmul.mubr.bf16.vlgmr.msra.gmra.mrb[56].mxu0 %v2635_v25  ;;  %v2631_v45 = vmax.f32 %v2611_v26, %v2623_v35  ;;  %3107 = vmatpush1.bf16.msra.mxu1 %v4613_v12  ;;  %v4621_v25 = vld [vmem:[%s5983_s23 + $0xc8] sm:$0xff]   ;;  %v4624_v35 = vld [vmem:[%s5983_s23 + $0x50] sm:$0xff]   ;;  %v2874_v12 = vrot.slane %v2857_v8, %v5282_v63 }
 0x750   :  { %v2626_v43 = vmul.f32 0.01, %v2617_v41  ;;  %3040 = vmatpush1.bf16.msra.mxu0 %v4568_v34  ;;  %v2632_v48 = vmax.f32 %v2613_v28, %v2624_v40  ;;  %4195 = vmatprep.subr.bf16.mxu1 %v4617_v3  ;;  %v4622_v33 = vld [vmem:[%s5983_s23 + $0x8] sm:$0xff]   ;;  %v4626_v40 = vld [vmem:[%s5983_s23 + $0x10] sm:$0xff]  }
 0x751   :  { %v2633_v46 = vmax.f32 %v2615_v36, %v2625_v42  ;;  %3041 = vmatprep.subr.bf16.mxu0 %v4576_v39  ;;  %v4623_v34 = vld [vmem:[%s5983_s23 + $0x88] sm:$0xff]   ;;  %v4628_v42 = vld [vmem:[%s5983_s23 + $0x58] sm:$0xff]  }
 0x752   :  { %v2634_v51 = vmax.f32 %v2617_v41, %v2626_v43  ;;  %v4627_v41 = vld [vmem:[%s5983_s23 + $0x90] sm:$0xff]   ;;  %v4629_v43 = vld [vmem:[%s5983_s23 + $0xd8] sm:$0xff]  }
 0x753   :  { %v2637_v52 = vpack.c.bf16 %v2633_v46, %v2631_v45  ;;  %v4631_v45 = vld [vmem:[%s5983_s23 + $0x98] sm:$0xff]   ;;  %v4632_v46 = vld [vmem:[%s5983_s23 + $0x60] sm:$0xff]  }
 0x754   :  { %v2638_v53 = vpack.c.bf16 %v2634_v51, %v2632_v48  ;;  %3042 = vmatpush1.bf16.msra.mxu0 %v4574_v44  ;;  %v4630_v44 = vld [vmem:[%s5983_s23 + $0x18] sm:$0xff]   ;;  %v4634_v48 = vld [vmem:[%s5983_s23 + $0x20] sm:$0xff]  }
 0x755   :  { %3043 = vmatprep.subr.bf16.mxu0 %v4582_v47  ;;  %v4633_v47 = vld [vmem:[%s5983_s23 + $0xe0] sm:$0xff]  }
 0x756   :  { %2814 = vmatprep.mubr.bf16.mxu0 %v2638_v53  ;;  %v4635_v51 = vld [vmem:[%s5983_s23 + $0xa0] sm:$0xff]   ;;  %v4637_v53 = vld [vmem:[%s5983_s23 + $0xe8] sm:$0xff]  }
 0x757   :  { %2815 = vmatmul.mubr.bf16.gmra.mrb[60].mxu0 %v2637_v52  ;;  %v4636_v52 = vld [vmem:[%s5983_s23 + $0x68] sm:$0xff]  }
 0x758   :  { %3044 = vmatpush1.bf16.msra.mxu0 %v4580_v54  ;;  %3071 = vmatprep.mubr.bf16.mxu0 %v4700_v2  ;;  %v4638_v54 = vld [vmem:[%s5983_s23 + $0x28] sm:$0xff]  }
 0x759   :  { %3045 = vmatprep.subr.bf16.mxu0 %v4588_v55  ;;  %v4639_v55 = vld [vmem:[%s5983_s23 + $0xa8] sm:$0xff]  }
 0x75c   :  { %3046 = vmatpush1.bf16.msra.mxu0 %v4586_v31  ;;  %v4640_v31 = vld [vmem:[%s5983_s23 + $0x70] sm:$0xff]  }
 0x75d   :  { %3047 = vmatprep.subr.bf16.mxu0 %v4594_v38  ;;  %v4641_v38 = vld [vmem:[%s5983_s23 + $0xf0] sm:$0xff]  }
 0x760   :  { %3048 = vmatpush1.bf16.msra.mxu0 %v4592_v56  ;;  %v4642_v56 = vld [vmem:[%s5983_s23 + $0x30] sm:$0xff]  }
 0x761   :  { %3049 = vmatprep.subr.bf16.mxu0 %v4600_v57  ;;  %v4643_v57 = vld [vmem:[%s5983_s23 + $0xb0] sm:$0xff]  }
 0x764   :  { %3050 = vmatpush1.bf16.msra.mxu0 %v4598_v58  ;;  %v4644_v58 = vld [vmem:[%s5983_s23 + $0x78] sm:$0xff]  }
 0x765   :  { %3051 = vmatprep.subr.bf16.mxu0 %v4606_v59  ;;  %v4645_v59 = vld [vmem:[%s5983_s23 + $0xf8] sm:$0xff]  }
 0x768   :  { %3052 = vmatpush1.bf16.msra.mxu0 %v4604_v62  ;;  %v4647_v62 = vld [vmem:[%s5983_s23 + $0xb8] sm:$0xff]  }
 0x769   :  { %3053 = vmatprep.subr.bf16.mxu0 %v4612_v9  ;;  %v2862_v9 = vrot.slane %v2857_v8, %v5037_v4 }
 0x76c   :  { %3054 = vmatpush1.bf16.msra.mxu0 %v4610_v11  ;;  %v2866_v11 = vrot.slane %v2857_v8, %v5043_v6 }
 0x76d   :  { %4167 = vmatprep.subr.bf16.mxu0 %v4616_v17 }
 0x822   :  { %v4155_v18 = vpop.f32.mrb[56].mxu0 }
 0x823   :  { %v4156_v0 = vpop.f32.mrb[57].mxu0 }
 0x824   :  { %v4157_v1 = vadd.f32 %v4156_v0, %v4155_v18  ;;  %v4158_v5 = vpop.f32.mrb[58].mxu0 }
 0x825   :  { %v4159_v19 = vpop.f32.mrb[59].mxu0 }
 0x826   :  { %v4160_v20 = vadd.f32 %v4159_v19, %v4158_v5  ;;  %v2809_v21 = vadd.f32 %v4157_v1, %v3917_v7 }
 0x828   :  { %v2812_v22 = vadd.f32 %v4160_v20, %v3917_v7 }
 0x82a   :  { %v2823_v23 = vpack.c.bf16 %v2812_v22, %v2809_v21  ;;  %v4161_v13 = vpop.f32.mrb[60].mxu0 }
 0x82b   :  { %v4162_v16 = vpop.f32.mrb[61].mxu0 }
 0x82c   :  { %v4163_v26 = vadd.f32 %v4162_v16, %v4161_v13  ;;  %v4164_v27 = vpop.f32.mrb[62].mxu0  ;;  %3072 = vmatmul.mubr.bf16.vlgmr.msra.gmra.mrb[64].mxu0 %v2823_v23  ;;  %3125 = vmatmul.mubr.bf16.vlgmr.msra.gmra.mrb[48].mxu1 %v2823_v23 }
 0x82d   :  { %v4165_v28 = vpop.f32.mrb[63].mxu0  ;;  %3081 = vmatprep.mubr.bf16.mxu0 %v4700_v2  ;;  %3134 = vmatprep.mubr.bf16.mxu1 %v4700_v2  ;;  %v4625_v2 = vld [vmem:[%s5983_s23 + $0xd0] sm:$0xff]  }
 0x82e   :  { %v4166_v32 = vadd.f32 %v4165_v28, %v4164_v27  ;;  %4168 = vmatpush3.bf16.msra.mxu0 %v4618_v14  ;;  %4196 = vmatpush3.bf16.msra.mxu1 %v4619_v15  ;;  %v2817_v36 = vadd.f32 %v4163_v26, %v3917_v7 }
 0x82f   :  { %4169 = vmatprep.subr.bf16.mxu0 %v4620_v24  ;;  %4197 = vmatprep.subr.bf16.mxu1 %v4621_v25 }
 0x830   :  { %v2820_v37 = vadd.f32 %v4166_v32, %v3917_v7 }
 0x832   :  { %v2824_v39 = vpack.c.bf16 %v2820_v37, %v2817_v36  ;;  %4170 = vmatpush3.bf16.msra.mxu0 %v4622_v33  ;;  %4198 = vmatpush3.bf16.msra.mxu1 %v4623_v34 }
 0x833   :  { %4171 = vmatprep.subr.bf16.mxu0 %v4624_v35  ;;  %4199 = vmatprep.subr.bf16.mxu1 %v4625_v2 }
 0x834   :  { %3082 = vmatmul.mubr.bf16.gmra.mrb[68].mxu0 %v2824_v39  ;;  %3135 = vmatmul.mubr.bf16.gmra.mrb[52].mxu1 %v2824_v39 }
 0x836   :  { %4172 = vmatpush3.bf16.msra.mxu0 %v4626_v40  ;;  %4200 = vmatpush3.bf16.msra.mxu1 %v4627_v41 }
 0x837   :  { %4173 = vmatprep.subr.bf16.mxu0 %v4628_v42  ;;  %4201 = vmatprep.subr.bf16.mxu1 %v4629_v43 }
 0x83a   :  { %4174 = vmatpush3.bf16.msra.mxu0 %v4630_v44  ;;  %4202 = vmatpush3.bf16.msra.mxu1 %v4631_v45 }
 0x83b   :  { %4175 = vmatprep.subr.bf16.mxu0 %v4632_v46  ;;  %4203 = vmatprep.subr.bf16.mxu1 %v4633_v47 }
 0x83e   :  { %4176 = vmatpush3.bf16.msra.mxu0 %v4634_v48  ;;  %4204 = vmatpush3.bf16.msra.mxu1 %v4635_v51 }
 0x83f   :  { %4177 = vmatprep.subr.bf16.mxu0 %v4636_v52  ;;  %4205 = vmatprep.subr.bf16.mxu1 %v4637_v53 }
 0x842   :  { %4178 = vmatpush3.bf16.msra.mxu0 %v4638_v54  ;;  %4206 = vmatpush3.bf16.msra.mxu1 %v4639_v55 }
 0x843   :  { %4179 = vmatprep.subr.bf16.mxu0 %v4640_v31  ;;  %4207 = vmatprep.subr.bf16.mxu1 %v4641_v38 }
 0x846   :  { %4180 = vmatpush3.bf16.msra.mxu0 %v4642_v56  ;;  %4208 = vmatpush3.bf16.msra.mxu1 %v4643_v57 }
 0x847   :  { %4181 = vmatprep.subr.bf16.mxu0 %v4644_v58  ;;  %4209 = vmatprep.subr.bf16.mxu1 %v4645_v59 }
 0x84a   :  { %4182 = vmatpush3.bf16.msra.mxu0 %v4646_v60  ;;  %4210 = vmatpush3.bf16.msra.mxu1 %v4647_v62 }
 0x8ff   :  { %v3073_v17 = vpop.f32.mrb[64].mxu0  ;;  %v3126_v3 = vpop.f32.mrb[48].mxu1 }
 0x900   :  { %v3074_v18 = vadd.f32 %v3073_v17, %v2862_v9  ;;  %v3127_v0 = vadd.f32 %v3126_v3, %v2870_v10  ;;  %v3075_v1 = vpop.f32.mrb[65].mxu0  ;;  %v3128_v5 = vpop.f32.mrb[49].mxu1 }
 0x901   :  { %v3076_v7 = vadd.f32 %v3075_v1, %v2866_v11  ;;  %v3129_v19 = vadd.f32 %v3128_v5, %v2874_v12  ;;  %v3077_v20 = vpop.f32.mrb[66].mxu0  ;;  %v3130_v21 = vpop.f32.mrb[50].mxu1 }
 0x902   :  { %v3145_v22 = vmul.f32 0.01, %v3074_v18  ;;  %v3147_v23 = vmul.f32 0.01, %v3127_v0  ;;  %v3078_v13 = vadd.f32 %v3077_v20, %v2862_v9  ;;  %v3131_v4 = vadd.f32 %v3130_v21, %v2870_v10  ;;  %v3079_v14 = vpop.f32.mrb[67].mxu0  ;;  %v3132_v61 = vpop.f32.mrb[51].mxu1 }
 0x903   :  { %v3146_v15 = vmul.f32 0.01, %v3076_v7  ;;  %v3148_v6 = vmul.f32 0.01, %v3129_v19  ;;  %v3080_v16 = vadd.f32 %v3079_v14, %v2866_v11  ;;  %v3133_v63 = vadd.f32 %v3132_v61, %v2874_v12  ;;  %v3966_v14 = vld [vmem:[%s5984_s24] ss:$0 sm:$0xff] }
 0x904   :  { %v3149_v24 = vmul.f32 0.01, %v3078_v13  ;;  %v3151_v25 = vmul.f32 0.01, %v3131_v4  ;;  %v3161_v28 = vmax.f32 %v3074_v18, %v3145_v22  ;;  %v3163_v32 = vmax.f32 %v3127_v0, %v3147_v23  ;;  %s4701_s24 = smov [#allocation2]  }
 0x905   :  { %v3150_v26 = vmul.f32 0.01, %v3080_v16  ;;  %v3152_v27 = vmul.f32 0.01, %v3133_v63  ;;  %v3162_v35 = vmax.f32 %v3076_v7, %v3146_v15  ;;  %v3164_v2 = vmax.f32 %v3129_v19, %v3148_v6  ;;  %s3650_s19 = sshll.u32 %s4701_s24, 4  ;;  %s3651_s19 = int_to_ptr.vmem [resolvable:$true] %s3650_s19 }
 0x906   :  { %v3165_v33 = vmax.f32 %v3078_v13, %v3149_v24  ;;  %v3167_v34 = vmax.f32 %v3131_v4, %v3151_v25  ;;  %s4664_s10 = scalar_lea.vmem %s3651_s19, 256  ;;  %p4669_p1 = scmp.lt.s32.totalorder %s3651_s19, %s3651_s19 }
 0x907   :  { %v3166_v36 = vmax.f32 %v3080_v16, %v3150_v26  ;;  %v3168_v37 = vmax.f32 %v3133_v63, %v3152_v27  ;;  %v3083_v39 = vpop.f32.mrb[68].mxu0  ;;  %v3136_v40 = vpop.f32.mrb[52].mxu1  ;;  %p4665_p0 = scmp.ne.s32.totalorder %s3651_s19, %s4664_s10  ;;  %p4670_p2 = scmp.lt.s32.totalorder %s4664_s10, %s4664_s10 }
 0x908   :  { %v3177_v41 = vpack.c.bf16 %v3165_v33, %v3161_v28  ;;  %v3179_v42 = vpack.c.bf16 %v3167_v34, %v3163_v32  ;;  %v3084_v43 = vadd.f32 %v3083_v39, %v2862_v9  ;;  %v3137_v44 = vadd.f32 %v3136_v40, %v2870_v10  ;;  %v3085_v45 = vpop.f32.mrb[69].mxu0  ;;  %v3138_v46 = vpop.f32.mrb[53].mxu1 }
 0x909   :  { %v3086_v47 = vadd.f32 %v3085_v45, %v2866_v11  ;;  %v3139_v48 = vadd.f32 %v3138_v46, %v2874_v12  ;;  %v3087_v51 = vpop.f32.mrb[70].mxu0  ;;  %v3140_v52 = vpop.f32.mrb[54].mxu1  ;;  %v3178_v53 = vpack.c.bf16 %v3166_v36, %v3162_v35  ;;  %v3180_v54 = vpack.c.bf16 %v3168_v37, %v3164_v2  ;;  %p4671_p3 = por %p4670_p2, %p4669_p1 }
 0x90a   :  { %v3153_v55 = vmul.f32 0.01, %v3084_v43  ;;  %v3155_v31 = vmul.f32 0.01, %v3137_v44  ;;  %v3088_v38 = vadd.f32 %v3087_v51, %v2862_v9  ;;  %v3141_v56 = vadd.f32 %v3140_v52, %v2870_v10  ;;  %v3089_v57 = vpop.f32.mrb[71].mxu0  ;;  %v3142_v58 = vpop.f32.mrb[55].mxu1 }
 0x90b   :  { %v3154_v59 = vmul.f32 0.01, %v3086_v47  ;;  %v3156_v60 = vmul.f32 0.01, %v3139_v48  ;;  %v3090_v62 = vadd.f32 %v3089_v57, %v2866_v11  ;;  %v3143_v8 = vadd.f32 %v3142_v58, %v2874_v12  ;;  %3480 = vmatprep.mubr.bf16.mxu0 %v3178_v53  ;;  %3529 = vmatprep.mubr.bf16.mxu1 %v3180_v54  ;;  %v3555_v57 = vpop.xlane.xlu1 %3554  ;;  %p4672_p4 = pnand %p4671_p3, %p4665_p0 }
 0x90c   :  { %v3157_v17 = vmul.f32 0.01, %v3088_v38  ;;  %v3159_v3 = vmul.f32 0.01, %v3141_v56  ;;  %3481 = vmatmul.mubr.bf16.vlgmr.msra.gmra.mrb[72].mxu0 %v3177_v41  ;;  %3530 = vmatmul.mubr.bf16.vlgmr.msra.gmra.mrb[56].mxu1 %v3179_v42  ;;  %v3169_v1 = vmax.f32 %v3084_v43, %v3153_v55  ;;  %v3171_v5 = vmax.f32 %v3137_v44, %v3155_v31 }
 0x90d   :  { %v3158_v18 = vmul.f32 0.01, %v3090_v62  ;;  %v3160_v0 = vmul.f32 0.01, %v3143_v8  ;;  %v3170_v9 = vmax.f32 %v3086_v47, %v3154_v59  ;;  %v3172_v10 = vmax.f32 %v3139_v48, %v3156_v60 }
 0x90e   :  { %v3173_v7 = vmax.f32 %v3088_v38, %v3157_v17  ;;  %v3175_v19 = vmax.f32 %v3141_v56, %v3159_v3  ;;  %v3551_v56 = vpop.xlane.xlu0 %3550  ;;  %v3560_v17 = vmax.f32 %v3555_v57, 1e-24 }
 0x90f   :  { %v3174_v20 = vmax.f32 %v3090_v62, %v3158_v18  ;;  %v3176_v21 = vmax.f32 %v3143_v8, %v3160_v0  ;;  %v3557_v59 = vpop.xlane.xlu1 %3556  ;;  %v3558_v60 = vmax.f32 %v3551_v56, 1e-24 }
 0x910   :  { %v3181_v22 = vpack.c.bf16 %v3173_v7, %v3169_v1  ;;  %v3183_v23 = vpack.c.bf16 %v3175_v19, %v3171_v5  ;;  %v3561_v19 = vmax.f32 %v3557_v59, 1e-24 }
 0x911   :  { %v3182_v11 = vpack.c.bf16 %v3174_v20, %v3170_v9  ;;  %v3184_v12 = vpack.c.bf16 %v3176_v21, %v3172_v10  ;;  %4648 = vrsqrt.f32 %v3558_v60 }
 0x912   :  { %v3553_v58 = vpop.xlane.xlu0 %3552 }
 0x913   :  { %3488 = vmatprep.mubr.bf16.mxu0 %v3182_v11  ;;  %3537 = vmatprep.mubr.bf16.mxu1 %v3184_v12  ;;  %v3559_v8 = vmax.f32 %v3553_v58, 1e-24 }
 0x914   :  { %3489 = vmatmul.mubr.bf16.gmra.mrb[76].mxu0 %v3181_v22  ;;  %3538 = vmatmul.mubr.bf16.gmra.mrb[60].mxu1 %v3183_v23 }
 0x915   :  { %4650 = vrsqrt.f32 %v3559_v8 }
 0x916   :  { %4652 = vrsqrt.f32 %v3560_v17 }
 0x91b   :  { %v4649_v10 = vpop.eup %4648 }
 0x91c   :  { %v3566_v12 = vmul.f32 %v4649_v10, %v5639_v29 }
 0x91f   :  { %v4651_v20 = vpop.eup %4650 }
 0x920   :  { %v4653_v21 = vpop.eup %4652 }
 0x9df   :  { %v4183_v13 = vpop.f32.mrb[72].mxu0  ;;  %v4211_v4 = vpop.f32.mrb[56].mxu1 }
 0x9e0   :  { %v4184_v61 = vpop.f32.mrb[73].mxu0  ;;  %v4212_v15 = vpop.f32.mrb[57].mxu1 }
 0x9e1   :  { %v4185_v6 = vadd.f32 %v4184_v61, %v4183_v13  ;;  %v4213_v16 = vadd.f32 %v4212_v15, %v4211_v4  ;;  %v4186_v63 = vpop.f32.mrb[74].mxu0  ;;  %v4214_v24 = vpop.f32.mrb[58].mxu1  ;;  %v3567_v61 = vmul.f32 %v4651_v20, %v5641_v30 }
 0x9e2   :  { %v4187_v25 = vpop.f32.mrb[75].mxu0  ;;  %v4215_v26 = vpop.f32.mrb[59].mxu1 }
 0x9e3   :  { %v3483_v27 = vadd.f32 %v4185_v6, %v3966_v14  ;;  %v4188_v28 = vadd.f32 %v4187_v25, %v4186_v63  ;;  %v4216_v32 = vadd.f32 %v4215_v26, %v4214_v24  ;;  %v3568_v24 = vmul.f32 %v4653_v21, %v5647_v49 }
 0x9e5   :  { %v5922_v33 = vadd.f32 %v4213_v16, %v3483_v27  ;;  %v3486_v34 = vadd.f32 %v4188_v28, %v3966_v14 }
 0x9e7   :  { %v5924_v35 = vadd.f32 %v4216_v32, %v3486_v34  ;;  %v4189_v2 = vpop.f32.mrb[76].mxu0  ;;  %v4217_v36 = vpop.f32.mrb[60].mxu1  ;;  %v3570_v37 = vmul.f32 %v5922_v33, %v5922_v33 }
 0x9e8   :  { %v4190_v39 = vpop.f32.mrb[77].mxu0  ;;  %v4218_v40 = vpop.f32.mrb[61].mxu1 }
 0x9e9   :  { %v4191_v41 = vadd.f32 %v4190_v39, %v4189_v2  ;;  %v4219_v42 = vadd.f32 %v4218_v40, %v4217_v36  ;;  %v4192_v43 = vpop.f32.mrb[78].mxu0  ;;  %v4220_v44 = vpop.f32.mrb[62].mxu1  ;;  %3574 = vadd.xlane.f32.xlu0 %v3570_v37  ;;  %v3571_v45 = vmul.f32 %v5924_v35, %v5924_v35 }
 0x9ea   :  { %v4193_v46 = vpop.f32.mrb[79].mxu0  ;;  %v4221_v47 = vpop.f32.mrb[63].mxu1 }
 0x9eb   :  { %v3491_v48 = vadd.f32 %v4191_v41, %v3966_v14  ;;  %v4194_v51 = vadd.f32 %v4193_v46, %v4192_v43  ;;  %v4222_v52 = vadd.f32 %v4221_v47, %v4220_v44  ;;  %3576 = vadd.xlane.f32.xlu1 %v3571_v45 }
 0x9ed   :  { %v3540_v53 = vadd.f32 %v4219_v42, %v3491_v48  ;;  %v3494_v54 = vadd.f32 %v4194_v51, %v3966_v14 }
 0x9ef   :  { %v3543_v55 = vadd.f32 %v4222_v52, %v3494_v54  ;;  %v3572_v31 = vmul.f32 %v3540_v53, %v3540_v53 }
 0x9f1   :  { %3578 = vadd.xlane.f32.xlu0 %v3572_v31  ;;  %v3573_v38 = vmul.f32 %v3543_v55, %v3543_v55 }
 0x9f3   :  { %3580 = vadd.xlane.f32.xlu1 %v3573_v38 }
 0xa76   :  { %v3575_v62 = vpop.xlane.xlu0 %3574 }
 0xa77   :  { %v3582_v18 = vmax.f32 %v3575_v62, 1e-24 }
 0xa78   :  { %v3577_v3 = vpop.xlane.xlu1 %3576 }
 0xa79   :  { %v3583_v0 = vmax.f32 %v3577_v3, 1e-24  ;;  %4654 = vrsqrt.f32 %v3582_v18 }
 0xa7e   :  { %v3579_v1 = vpop.xlane.xlu0 %3578 }
 0xa7f   :  { %v3584_v5 = vmax.f32 %v3579_v1, 1e-24 }
 0xa80   :  { %v3581_v7 = vpop.xlane.xlu1 %3580 }
 0xa81   :  { %4656 = vrsqrt.f32 %v3584_v5  ;;  %v3585_v9 = vmax.f32 %v3581_v7, 1e-24 }
 0xa82   :  { %4658 = vrsqrt.f32 %v3583_v0 }
 0xa83   :  { %4660 = vrsqrt.f32 %v3585_v9  ;;  %v4655_v22 = vpop.eup %4654 }
 0xa84   :  { %4662 = vrsqrt.f32 %v3561_v19  ;;  %v3590_v6 = vmul.f32 %v4655_v22, %v5922_v33 }
 0xa86   :  { %v3600_v26 = vmul.f32 %v3590_v6, %v3568_v24 }
 0xa8b   :  { %v4657_v23 = vpop.eup %4656 }
 0xa8c   :  { %v4659_v11 = vpop.eup %4658  ;;  %v3592_v13 = vmul.f32 %v4657_v23, %v3540_v53 }
 0xa8d   :  { %v4661_v4 = vpop.eup %4660  ;;  %v3591_v25 = vmul.f32 %v4659_v11, %v5924_v35 }
 0xa8e   :  { %v3594_v14 = vmul.f32 %v3592_v13, %v3566_v12  ;;  %v3593_v15 = vmul.f32 %v4661_v4, %v3543_v55  ;;  %v4663_v16 = vpop.eup %4662 }
 0xa8f   :  { %v3569_v27 = vmul.f32 %v4663_v16, %v5649_v50 }
 0xa90   :  { %3596 = vadd.xlane.f32.xlu0 %v3594_v14  ;;  %v3595_v63 = vmul.f32 %v3593_v15, %v3567_v61 }
 0xa91   :  { %v3601_v29 = vmul.f32 %v3591_v25, %v3569_v27 }
 0xa92   :  { %3598 = vadd.xlane.f32.xlu1 %v3595_v63 }
 0xa94   :  { %3602 = vadd.xlane.f32.xlu0 %v3600_v26 }
 0xa96   :  { %3604 = vadd.xlane.f32.xlu1 %v3601_v29 }
 0xb1d   :  { %v3597_v28 = vpop.xlane.xlu0 %3596 }
 0xb1e   :  { %v3606_v32 = vmul.f32 2.0, %v3597_v28 }
 0xb1f   :  { %v3599_v30 = vpop.xlane.xlu1 %3598 }
 0xb20   :  { %v3608_v34 = vsub.f32 2.0, %v3606_v32  ;;  %v3607_v2 = vmul.f32 2.0, %v3599_v30 }
 0xb21   :  { %v3603_v33 = vpop.xlane.xlu0 %3602 }
 0xb22   :  { %v3609_v36 = vsub.f32 2.0, %v3607_v2  ;;  %v3623_v37 = vmul.f32 2.0, %v3603_v33  ;;  %v3611_v35 = vsel %vm3610_vm0, %v3608_v34, 0.0 }
 0xb23   :  { %v3605_v39 = vpop.xlane.xlu1 %3604 }
 0xb24   :  { %v3625_v49 = vsub.f32 2.0, %v3623_v37  ;;  %v3624_v40 = vmul.f32 2.0, %v3605_v39  ;;  %v3612_v41 = vsel %vm3610_vm0, %v3609_v36, 0.0 }
 0xb25   :  { %v3613_v42 = vadd.f32 %v3612_v41, %v3611_v35 }
 0xb26   :  { %v3626_v43 = vsub.f32 2.0, %v3624_v40  ;;  %v3627_v50 = vsel %vm3610_vm0, %v3625_v49, 0.0 }
 0xb27   :  { %3614 = vadd.xlane.f32.xlu0 %v3613_v42 }
 0xb28   :  { %v3628_v44 = vsel %vm3610_vm0, %v3626_v43, 0.0 }
 0xb29   :  { %v3629_v45 = vadd.f32 %v3628_v44, %v3627_v50 }
 0xb2b   :  { %3630 = vadd.xlane.f32.xlu1 %v3629_v45 }
 0xb2c   :  { %4675 = shalt.err (!%p4672_p4)
}
 0xb2d   :  { %s4676_s17 = scalar_lea.hbm %s5985_s25, 256 }
 0xb2e   :  { %p4677_p5 = scmp.ne.s32.totalorder %s5985_s25, %s4676_s17  ;;  %p4680_p6 = scmp.lt.u32.totalorder %s4676_s17, %s5985_s25 }
 0xb30   :  { %p4682_p7 = pnand %p4680_p6, %p4677_p5 }
 0xb32   :  { %4685 = shalt.err (!%p4682_p7)
}
 0xb33   :  { %s4702_s3 = smov 128   ;;  %s4703_s28 = smov 8  }
 0xb34   :  { %3656 = dma.vmem_to_hbm [thread:$0]  %s3651_s19, 256, %s5985_s25, [#allocation3], %s4702_s3, %s4702_s3, %s4703_s28  }
 0xb35   :  { %s4686_s30 = scalar_lea.hbm %s5986_s26, 16 }
 0xb36   :  { %p4687_p8 = scmp.ne.s32.totalorder %s5986_s26, %s4686_s30  ;;  %p4690_p9 = scmp.lt.u32.totalorder %s4686_s30, %s5986_s26 }
 0xb38   :  { %p4692_p10 = pnand %p4690_p9, %p4687_p8 }
 0xbb4   :  { %v3615_v46 = vpop.xlane.xlu0 %3614 }
 0xbb5   :  { %v3616_v47 = vrot.slane %v3615_v46, 4 }
 0xbb7   :  { %v3617_v48 = vadd.f32 %v3616_v47, %v3615_v46 }
 0xbb8   :  { %v3631_v51 = vpop.xlane.xlu1 %3630 }
 0xbb9   :  { %v3618_v52 = vrot.slane %v3617_v48, 2  ;;  %v3632_v53 = vrot.slane %v3631_v51, 4 }
 0xbbb   :  { %v3633_v54 = vadd.f32 %v3632_v53, %v3631_v51  ;;  %v3619_v55 = vadd.f32 %v3618_v52, %v3617_v48 }
 0xbbd   :  { %v3634_v31 = vrot.slane %v3633_v54, 2  ;;  %v3620_v38 = vrot.slane %v3619_v55, 1 }
 0xbbf   :  { %v3635_v56 = vadd.f32 %v3634_v31, %v3633_v54  ;;  %v3621_v57 = vadd.f32 %v3620_v38, %v3619_v55 }
 0xbc1   :  { %4223 = vpush %v3621_v57  ;;  %v3636_v58 = vrot.slane %v3635_v56, 1 }
 0xbc3   :  { %v3637_v59 = vadd.f32 %v3636_v58, %v3635_v56 }
 0xbc5   :  { %4225 = vpush %v3637_v59 }
 0xbf2   :  { %s4224_s4 = spop %4223 }
 0xbf6   :  { %s4226_s0 = spop %4225 }
 0xbf7   :  { %s3639_s21 = sadd.f32 %s4226_s0, %s4224_s4 }
 0xbf9   :  { %s3642_s25 = smul.f32 0.0625, %s3639_s21 }
 0xbfb   :  { %3644 = sst [smem:[#allocation5]] %s3642_s25 }
 0xbfc   :  { %4695 = shalt.err (!%p4692_p10)
}
 0xbfd   :  { %s4704_s5 = smov [#allocation5]  }
 0xbfe   :  { %3664 = dma.smem_to_hbm %s4704_s5, 16, %s5986_s26, [#allocation4]  }
 0xbff   :  { %4696 = dma.done.wait [#allocation3], 256  }
 0xc00   :  { %4697 = vsyncadd [#allocation3], 4294967040 }
 0xc01   :  { %4698 = dma.done.wait [#allocation4], 16  }
 0xc02   :  { %4699 = vsyncadd [#allocation4], 4294967280 }
 0xc03   :  { %3671 = sfence }
 0xc04   :  { %3672 = vsyncpa [#allocation3], 1 }
 0xc05   :  { %3673 = vsyncpa [#allocation4], 1 }

</bundles_post_ra>
